<compile_context>
chip_gen: v6e
topology: v6e:2x2x1
jax: 0.10.0
libtpu: 0.0.40
codegen_flags: <defaults>
</compile_context>

<pallas_src>
import math

import jax
import jax.numpy as jnp
from jax.experimental import pallas as pl
from jax.experimental.pallas import tpu as pltpu

# ---- small synthetic CLIP-text config (mirrors CLIPTextModel structure) -----
B = 2            # batch (number of prompts)
S = 8            # max_length (sequence length, padded)
H = 32           # hidden size
NUM_HEADS = 4
HEAD_DIM = H // NUM_HEADS
MLP = 4 * H      # intermediate size
NUM_LAYERS = 2
VOCAB = 1000
LN_EPS = 1e-5


# ----------------------------- Pallas kernel ---------------------------------
def _layer_norm(x, w, b):
    """f32 LayerNorm over the last (hidden) axis; w, b are (1, H) rows."""
    mu = jnp.mean(x, axis=-1, keepdims=True)
    var = jnp.mean((x - mu) ** 2, axis=-1, keepdims=True)
    return (x - mu) * jax.lax.rsqrt(var + LN_EPS) * w + b


def clip_text_transformer_kernel(
    x_ref,                                   # (B*S, H) f32 embeddings
    wqkv_ref, bqkv_ref,                      # (1, H, 3H) bf16 / (1, 1, 3H) f32
    wo_ref, bo_ref,                          # (1, H, H)  bf16 / (1, 1, H)  f32
    w1_ref, b1_ref,                          # (1, H, MLP) bf16 / (1, 1, MLP) f32
    w2_ref, b2_ref,                          # (1, MLP, H) bf16 / (1, 1, H)  f32
    ln_ref,                                  # (1, 4, H) f32: ln1_w, ln1_b, ln2_w, ln2_b
    fln_ref,                                 # (2, H)    f32: final LN w, b
    o_ref,                                   # (B*S, H) f32 output
    x_acc,                                   # (B*S, H) f32 resident activations
):
    """One grid step = one CLIP encoder layer over the whole (B*S, H) slab."""
    layer = pl.program_id(0)

    @pl.when(layer == 0)
    def _():
        x_acc[...] = x_ref[...]                        # load embeddings once

    x = x_acc[...]                                     # (B*S, H) f32 residual stream

    ln = ln_ref[0]                                     # (4, H)
    ln1_w, ln1_b = ln[0:1, :], ln[1:2, :]
    ln2_w, ln2_b = ln[2:3, :], ln[3:4, :]

    # causal mask built in-kernel (no extra input DMA)
    row = jax.lax.broadcasted_iota(jnp.int32, (S, S), 0)
    col = jax.lax.broadcasted_iota(jnp.int32, (S, S), 1)
    causal = jnp.where(col <= row, 0.0, -1e9).astype(jnp.float32)   # (S, S)

    # ---- self-attention block (pre-LN, causal) ----
    h = _layer_norm(x, ln1_w, ln1_b)                   # f32 (B*S, H)

    # fused QKV projection: one lane-dense MXU matmul (scale folded into W_q / b_q)
    qkv = jnp.dot(h.astype(jnp.bfloat16), wqkv_ref[0],
                  preferred_element_type=jnp.float32) + bqkv_ref[0]  # (B*S, 3H) f32

    q = qkv[:, 0:H].reshape(B, S, H)
    k = qkv[:, H:2 * H].reshape(B, S, H)
    v = qkv[:, 2 * H:3 * H].reshape(B, S, H).astype(jnp.bfloat16)

    # heads split only for the score/context einsums (B-batched, MXU-shaped)
    ctx_heads = []
    for n in range(NUM_HEADS):                         # static & tiny
        sl = slice(n * HEAD_DIM, (n + 1) * HEAD_DIM)
        qn = q[:, :, sl].astype(jnp.bfloat16)          # (B, S, HD)
        kn = k[:, :, sl].astype(jnp.bfloat16)
        vn = v[:, :, sl]
        s = jnp.einsum("bqd,bkd->bqk", qn, kn,
                       preferred_element_type=jnp.float32) + causal[None]
        s = s - jnp.max(s, axis=-1, keepdims=True)     # f32 softmax
        p = jnp.exp(s)
        p = p * pl.reciprocal(jnp.sum(p, axis=-1, keepdims=True), approx=True)
        ctx_heads.append(jnp.einsum("bqk,bkd->bqd", p.astype(jnp.bfloat16), vn,
                                    preferred_element_type=jnp.float32))

    # head merge folded into ONE output-projection matmul (no per-head VPU sums)
    ctx = jnp.concatenate(ctx_heads, axis=-1).reshape(B * S, H)      # (B*S, H) f32
    attn = jnp.dot(ctx.astype(jnp.bfloat16), wo_ref[0],
                   preferred_element_type=jnp.float32) + bo_ref[0]
    x = x + attn                                       # residual

    # ---- MLP block (quick-GELU) ----
    h2 = _layer_norm(x, ln2_w, ln2_b)
    ff = jnp.dot(h2.astype(jnp.bfloat16), w1_ref[0],
                 preferred_element_type=jnp.float32) + b1_ref[0]     # (B*S, MLP) f32
    ff = ff * jax.nn.sigmoid(1.702 * ff)               # quick_gelu in f32
    ff = jnp.dot(ff.astype(jnp.bfloat16), w2_ref[0],
                 preferred_element_type=jnp.float32) + b2_ref[0]
    x = x + ff                                         # residual

    x_acc[...] = x

    @pl.when(layer == pl.num_programs(0) - 1)
    def _():
        fln = fln_ref[...]                             # (2, H)
        o_ref[...] = _layer_norm(x, fln[0:1, :], fln[1:2, :])   # final_layer_norm


# ------------------------------- wrappers ------------------------------------
_WEIGHT_KEYS = ("wqkv", "bqkv", "wo", "bo", "w1", "b1", "w2", "b2", "ln")


def _layer_spec(arr):
    nd = arr.ndim
    return pl.BlockSpec((1,) + tuple(arr.shape[1:]),
                        lambda l, _n=nd: (l,) + (0,) * (_n - 1))


def _const_spec(arr):
    nd = arr.ndim
    return pl.BlockSpec(tuple(arr.shape), lambda l, _n=nd: (0,) * _n)


def pack_params(params):
    """Host-side layout plumbing: fuse QKV, fold the attention scale, layer-stack,
    cast matmul weights to bf16 and keep biases as lane-major (1, N) f32 rows."""
    scale = HEAD_DIM ** -0.5

    def stack(fn):
        return jnp.stack([fn(lp) for lp in params["layers"]], axis=0)

    def qkv_weight(p):  # torch Linear weights are (out, in) -> transpose + fuse
        return jnp.concatenate([p["wq"].T * scale, p["wk"].T, p["wv"].T], axis=1)

    def qkv_bias(p):
        return jnp.concatenate([p["bq"] * scale, p["bk"], p["bv"]],
                               axis=0).reshape(1, 3 * H)

    return {
        "wqkv": stack(qkv_weight).astype(jnp.bfloat16),            # (L, H, 3H)
        "bqkv": stack(qkv_bias).astype(jnp.float32),               # (L, 1, 3H)
        "wo":   stack(lambda p: p["wo"].T).astype(jnp.bfloat16),   # (L, H, H)
        "bo":   stack(lambda p: p["bo"].reshape(1, H)).astype(jnp.float32),
        "w1":   stack(lambda p: p["w1"].T).astype(jnp.bfloat16),   # (L, H, MLP)
        "b1":   stack(lambda p: p["b1"].reshape(1, MLP)).astype(jnp.float32),
        "w2":   stack(lambda p: p["w2"].T).astype(jnp.bfloat16),   # (L, MLP, H)
        "b2":   stack(lambda p: p["b2"].reshape(1, H)).astype(jnp.float32),
        "ln":   stack(lambda p: jnp.stack(                         # (L, 4, H)
            [p["ln1_w"], p["ln1_b"], p["ln2_w"], p["ln2_b"]], axis=0)
        ).astype(jnp.float32),
        "fln":  jnp.stack([params["final_ln_w"], params["final_ln_b"]],
                          axis=0).astype(jnp.float32),             # (2, H)
    }


def clip_text_transformer(x_flat, packed):
    layer_ws = [packed[k] for k in _WEIGHT_KEYS]
    fln = packed["fln"]
    in_specs = ([_const_spec(x_flat)]
                + [_layer_spec(w) for w in layer_ws]
                + [_const_spec(fln)])

    # explicit scoped-VMEM budget: double-buffered per-layer weight blocks
    # + activations/scratch + headroom (required at real CLIP size; cheap here).
    per_layer_bytes = sum(math.prod(w.shape[1:]) * w.dtype.itemsize
                          for w in layer_ws)
    vmem_bytes = max(16 * 1024 * 1024,
                     4 * per_layer_bytes + 8 * x_flat.size * 4 + (1 << 20))

    return pl.pallas_call(
        clip_text_transformer_kernel,
        out_shape=jax.ShapeDtypeStruct((B * S, H), jnp.float32),
        grid=(NUM_LAYERS,),
        in_specs=in_specs,
        out_specs=pl.BlockSpec((B * S, H), lambda l: (0, 0)),
        scratch_shapes=[pltpu.VMEM((B * S, H), jnp.float32)],
        compiler_params=pltpu.CompilerParams(
            dimension_semantics=("arbitrary",),        # sequential layer loop
            vmem_limit_bytes=int(vmem_bytes)),
    )(x_flat, *layer_ws, fln)


@jax.jit
def clip_text_embedder_forward(token_ids, params):
    """Equivalent of CLIPTextEmbedder.forward on already-tokenized ids.

    Returns last_hidden_state of shape (B, S, H).
    """
    # embeddings (gather is glue, plain JAX)
    x = params["tok_emb"][token_ids] + params["pos_emb"][None, :, :]
    x = x.astype(jnp.float32).reshape(B * S, H)        # fold batch into sublanes

    packed = pack_params(params)                       # free host-side layout work
    out = clip_text_transformer(x, packed)             # (B*S, H)
    return out.reshape(B, S, H)


# --------------------------- deterministic init -------------------------------
def init_params(key):
    def normal(key, shape, std=0.02):
        return (std * jax.random.normal(key, shape)).astype(jnp.float32)

    keys = jax.random.split(key, 2 + NUM_LAYERS)
    params = {
        "tok_emb": normal(keys[0], (VOCAB, H)),
        "pos_emb": normal(keys[1], (S, H)),
        "final_ln_w": jnp.ones((H,), jnp.float32),
        "final_ln_b": jnp.zeros((H,), jnp.float32),
        "layers": [],
    }
    for li in range(NUM_LAYERS):
        lk = jax.random.split(keys[2 + li], 6)
        params["layers"].append({
            "ln1_w": jnp.ones((H,), jnp.float32),
            "ln1_b": jnp.zeros((H,), jnp.float32),
            "wq": normal(lk[0], (H, H)), "bq": jnp.zeros((H,), jnp.float32),
            "wk": normal(lk[1], (H, H)), "bk": jnp.zeros((H,), jnp.float32),
            "wv": normal(lk[2], (H, H)), "bv": jnp.zeros((H,), jnp.float32),
            "wo": normal(lk[3], (H, H)), "bo": jnp.zeros((H,), jnp.float32),
            "ln2_w": jnp.ones((H,), jnp.float32),
            "ln2_b": jnp.zeros((H,), jnp.float32),
            "w1": normal(lk[4], (MLP, H)), "b1": jnp.zeros((MLP,), jnp.float32),
            "w2": normal(lk[5], (H, MLP)), "b2": jnp.zeros((H,), jnp.float32),
        })
    return params


if __name__ == "__main__":
    key = jax.random.PRNGKey(0)
    pkey, tkey = jax.random.split(key)
    params = init_params(pkey)
    # "tokenized prompts": (B, S) int32 ids, padded to max_length=S
    token_ids = jax.random.randint(tkey, (B, S), 0, VOCAB, dtype=jnp.int32)

    last_hidden_state = clip_text_embedder_forward(token_ids, params)
    jax.block_until_ready(last_hidden_state)
    assert last_hidden_state.shape == (B, S, H)
    assert last_hidden_state.dtype == jnp.float32
    print("KERNEL_OK")
</pallas_src>

<mosaic_0001>
module attributes {stable_mosaic.version = 11 : i64} {
  func.func @clip_text_transformer_kernel(%arg0: i32, %arg1: memref<16x32xf32, #tpu.memory_space<vmem>>, %arg2: memref<1x32x96xbf16, #tpu.memory_space<vmem>>, %arg3: memref<1x1x96xf32, #tpu.memory_space<vmem>>, %arg4: memref<1x32x32xbf16, #tpu.memory_space<vmem>>, %arg5: memref<1x1x32xf32, #tpu.memory_space<vmem>>, %arg6: memref<1x32x128xbf16, #tpu.memory_space<vmem>>, %arg7: memref<1x1x128xf32, #tpu.memory_space<vmem>>, %arg8: memref<1x128x32xbf16, #tpu.memory_space<vmem>>, %arg9: memref<1x1x32xf32, #tpu.memory_space<vmem>>, %arg10: memref<1x4x32xf32, #tpu.memory_space<vmem>>, %arg11: memref<2x32xf32, #tpu.memory_space<vmem>>, %arg12: memref<16x32xf32, #tpu.memory_space<vmem>>, %arg13: memref<16x32xf32, #tpu.memory_space<vmem>>) attributes {dimension_semantics = [#tpu.dimension_semantics<arbitrary>], iteration_bounds = array<i64: 2>, scalar_prefetch = 0 : i64, scratch_operands = 1 : i64, tpu.core_type = #tpu.core_type<tc>, window_params = [{pipeline_mode = #tpu.pipeline_mode<synchronous>, transform_indices = @transform_0, window_bounds = array<i64: 16, 32>}, {transform_indices = @transform_1, window_bounds = array<i64: 1, 32, 96>}, {transform_indices = @transform_2, window_bounds = array<i64: 1, 1, 96>}, {transform_indices = @transform_3, window_bounds = array<i64: 1, 32, 32>}, {transform_indices = @transform_4, window_bounds = array<i64: 1, 1, 32>}, {transform_indices = @transform_5, window_bounds = array<i64: 1, 32, 128>}, {transform_indices = @transform_6, window_bounds = array<i64: 1, 1, 128>}, {transform_indices = @transform_7, window_bounds = array<i64: 1, 128, 32>}, {transform_indices = @transform_8, window_bounds = array<i64: 1, 1, 32>}, {transform_indices = @transform_9, window_bounds = array<i64: 1, 4, 32>}, {pipeline_mode = #tpu.pipeline_mode<synchronous>, transform_indices = @transform_10, window_bounds = array<i64: 2, 32>}, {pipeline_mode = #tpu.pipeline_mode<synchronous>, transform_indices = @transform_11, window_bounds = array<i64: 16, 32>}]} {
    %c0_i32 = arith.constant 0 : i32
    %0 = arith.cmpi eq, %arg0, %c0_i32 : i32
    %1 = arith.extui %0 : i1 to i32
    %c0_i32_0 = arith.constant 0 : i32
    %2 = arith.cmpi ne, %1, %c0_i32_0 : i32
    scf.if %2 {
      %c0_65 = arith.constant 0 : index
      %c0_66 = arith.constant 0 : index
      %199 = vector.load %arg1[%c0_65, %c0_66] : memref<16x32xf32, #tpu.memory_space<vmem>>, vector<16x32xf32>
      %c0_67 = arith.constant 0 : index
      %c0_68 = arith.constant 0 : index
      %200 = vector.load %arg13[%c0_67, %c0_68] : memref<16x32xf32, #tpu.memory_space<vmem>>, vector<16x32xf32>
      tpu.vector_store %arg13[%c0_67, %c0_68], %199 {strides = array<i32>} : memref<16x32xf32, #tpu.memory_space<vmem>>, vector<16x32xf32>,
    } else {
    }
    %c0 = arith.constant 0 : index
    %c0_1 = arith.constant 0 : index
    %3 = vector.load %arg13[%c0, %c0_1] : memref<16x32xf32, #tpu.memory_space<vmem>>, vector<16x32xf32>
    %c0_2 = arith.constant 0 : index
    %c0_3 = arith.constant 0 : index
    %c0_4 = arith.constant 0 : index
    %4 = vector.load %arg10[%c0_2, %c0_3, %c0_4] : memref<1x4x32xf32, #tpu.memory_space<vmem>>, vector<1x4x32xf32>
    %5 = vector.shape_cast %4 : vector<1x4x32xf32> to vector<4x32xf32>
    %6 = vector.extract_strided_slice %5 {offsets = [0, 0], sizes = [1, 32], strides = [1, 1]} : vector<4x32xf32> to vector<1x32xf32>
    %7 = vector.extract_strided_slice %5 {offsets = [1, 0], sizes = [1, 32], strides = [1, 1]} : vector<4x32xf32> to vector<1x32xf32>
    %8 = vector.extract_strided_slice %5 {offsets = [2, 0], sizes = [1, 32], strides = [1, 1]} : vector<4x32xf32> to vector<1x32xf32>
    %9 = vector.extract_strided_slice %5 {offsets = [3, 0], sizes = [1, 32], strides = [1, 1]} : vector<4x32xf32> to vector<1x32xf32>
    %10 = tpu.iota {dimensions = array<i32: 0>} : vector<8x8xi32>
    %11 = tpu.iota {dimensions = array<i32: 1>} : vector<8x8xi32>
    %12 = arith.cmpi sle, %11, %10 : vector<8x8xi32>
    %cst = arith.constant 0.000000e+00 : f32
    %cst_5 = arith.constant -1.000000e+09 : f32
    %13 = vector.broadcast %cst : f32 to vector<8x8xf32>
    %14 = vector.broadcast %cst_5 : f32 to vector<8x8xf32>
    %15 = arith.select %12, %13, %14 : vector<8x8xi1>, vector<8x8xf32>
    %cst_6 = arith.constant dense<0.000000e+00> : vector<16xf32>
    %16 = vector.multi_reduction <add>, %3, %cst_6 [1] : vector<16x32xf32> to vector<16xf32>
    %17 = vector.shape_cast %16 : vector<16xf32> to vector<16x1xf32>
    %cst_7 = arith.constant 3.200000e+01 : f32
    %18 = vector.broadcast %cst_7 : f32 to vector<16x1xf32>
    %19 = arith.divf %17, %18 : vector<16x1xf32>
    %20 = vector.broadcast %19 : vector<16x1xf32> to vector<16x32xf32>
    %21 = arith.subf %3, %20 : vector<16x32xf32>
    %22 = arith.mulf %21, %21 : vector<16x32xf32>
    %cst_8 = arith.constant dense<0.000000e+00> : vector<16xf32>
    %23 = vector.multi_reduction <add>, %22, %cst_8 [1] : vector<16x32xf32> to vector<16xf32>
    %24 = vector.shape_cast %23 : vector<16xf32> to vector<16x1xf32>
    %cst_9 = arith.constant 3.200000e+01 : f32
    %25 = vector.broadcast %cst_9 : f32 to vector<16x1xf32>
    %26 = arith.divf %24, %25 : vector<16x1xf32>
    %27 = vector.broadcast %19 : vector<16x1xf32> to vector<16x32xf32>
    %28 = arith.subf %3, %27 : vector<16x32xf32>
    %cst_10 = arith.constant 9.99999974E-6 : f32
    %29 = vector.broadcast %cst_10 : f32 to vector<16x1xf32>
    %30 = arith.addf %26, %29 : vector<16x1xf32>
    %31 = math.rsqrt %30 : vector<16x1xf32>
    %32 = vector.broadcast %31 : vector<16x1xf32> to vector<16x32xf32>
    %33 = arith.mulf %28, %32 : vector<16x32xf32>
    %34 = vector.broadcast %6 : vector<1x32xf32> to vector<16x32xf32>
    %35 = arith.mulf %33, %34 : vector<16x32xf32>
    %36 = vector.broadcast %7 : vector<1x32xf32> to vector<16x32xf32>
    %37 = arith.addf %35, %36 : vector<16x32xf32>
    %38 = arith.truncf %37 : vector<16x32xf32> to vector<16x32xbf16>
    %c0_11 = arith.constant 0 : index
    %c0_12 = arith.constant 0 : index
    %c0_13 = arith.constant 0 : index
    %39 = vector.load %arg2[%c0_11, %c0_12, %c0_13] : memref<1x32x96xbf16, #tpu.memory_space<vmem>>, vector<1x32x96xbf16>
    %40 = vector.shape_cast %39 : vector<1x32x96xbf16> to vector<32x96xbf16>
    %cst_14 = arith.constant dense<0.000000e+00> : vector<16x96xf32>
    %41 = tpu.matmul %38, %40, %cst_14 {dimension_numbers = #tpu.dot_dimension_numbers<[1], [0], [0], [1], [0, 0, 1, 1], [], []>} : vector<16x32xbf16>, vector<32x96xbf16>, vector<16x96xf32> -> vector<16x96xf32>
    %c0_15 = arith.constant 0 : index
    %c0_16 = arith.constant 0 : index
    %c0_17 = arith.constant 0 : index
    %42 = vector.load %arg3[%c0_15, %c0_16, %c0_17] : memref<1x1x96xf32, #tpu.memory_space<vmem>>, vector<1x1x96xf32>
    %43 = vector.shape_cast %42 : vector<1x1x96xf32> to vector<1x96xf32>
    %44 = vector.broadcast %43 : vector<1x96xf32> to vector<16x96xf32>
    %45 = arith.addf %41, %44 : vector<16x96xf32>
    %46 = vector.extract_strided_slice %45 {offsets = [0, 0], sizes = [16, 32], strides = [1, 1]} : vector<16x96xf32> to vector<16x32xf32>
    %47 = vector.shape_cast %46 : vector<16x32xf32> to vector<2x8x32xf32>
    %48 = vector.extract_strided_slice %45 {offsets = [0, 32], sizes = [16, 32], strides = [1, 1]} : vector<16x96xf32> to vector<16x32xf32>
    %49 = vector.shape_cast %48 : vector<16x32xf32> to vector<2x8x32xf32>
    %50 = vector.extract_strided_slice %45 {offsets = [0, 64], sizes = [16, 32], strides = [1, 1]} : vector<16x96xf32> to vector<16x32xf32>
    %51 = vector.shape_cast %50 : vector<16x32xf32> to vector<2x8x32xf32>
    %52 = arith.truncf %51 : vector<2x8x32xf32> to vector<2x8x32xbf16>
    %53 = vector.extract_strided_slice %47 {offsets = [0, 0, 0], sizes = [2, 8, 8], strides = [1, 1, 1]} : vector<2x8x32xf32> to vector<2x8x8xf32>
    %54 = arith.truncf %53 : vector<2x8x8xf32> to vector<2x8x8xbf16>
    %55 = vector.extract_strided_slice %49 {offsets = [0, 0, 0], sizes = [2, 8, 8], strides = [1, 1, 1]} : vector<2x8x32xf32> to vector<2x8x8xf32>
    %56 = arith.truncf %55 : vector<2x8x8xf32> to vector<2x8x8xbf16>
    %57 = vector.extract_strided_slice %52 {offsets = [0, 0, 0], sizes = [2, 8, 8], strides = [1, 1, 1]} : vector<2x8x32xbf16> to vector<2x8x8xbf16>
    "tpu.trace_start"() <{level = 10 : i32, message = "bqd,bkd->bqk"}> : () -> ()
    %cst_18 = arith.constant dense<0.000000e+00> : vector<2x8x8xf32>
    %58 = tpu.matmul %54, %56, %cst_18 {dimension_numbers = #tpu.dot_dimension_numbers<[2], [2], [1], [1], [0, 0, 0, 1, 1, 1], [0], [0]>} : vector<2x8x8xbf16>, vector<2x8x8xbf16>, vector<2x8x8xf32> -> vector<2x8x8xf32>
    "tpu.trace_stop"() : () -> ()
    %59 = vector.shape_cast %15 : vector<8x8xf32> to vector<1x8x8xf32>
    %60 = vector.broadcast %59 : vector<1x8x8xf32> to vector<2x8x8xf32>
    %61 = arith.addf %58, %60 : vector<2x8x8xf32>
    %cst_19 = arith.constant dense<0xFF800000> : vector<2x8xf32>
    %62 = vector.multi_reduction <maximumf>, %61, %cst_19 [2] : vector<2x8x8xf32> to vector<2x8xf32>
    %63 = vector.shape_cast %62 : vector<2x8xf32> to vector<2x8x1xf32>
    %64 = vector.broadcast %63 : vector<2x8x1xf32> to vector<2x8x8xf32>
    %65 = arith.subf %61, %64 : vector<2x8x8xf32>
    %66 = math.exp %65 : vector<2x8x8xf32>
    %cst_20 = arith.constant dense<0.000000e+00> : vector<2x8xf32>
    %67 = vector.multi_reduction <add>, %66, %cst_20 [2] : vector<2x8x8xf32> to vector<2x8xf32>
    %68 = vector.shape_cast %67 : vector<2x8xf32> to vector<2x8x1xf32>
    %69 = tpu.reciprocal %68 {approx = true} : vector<2x8x1xf32> -> vector<2x8x1xf32>
    %70 = vector.broadcast %69 : vector<2x8x1xf32> to vector<2x8x8xf32>
    %71 = arith.mulf %66, %70 : vector<2x8x8xf32>
    %72 = arith.truncf %71 : vector<2x8x8xf32> to vector<2x8x8xbf16>
    "tpu.trace_start"() <{level = 10 : i32, message = "bqk,bkd->bqd"}> : () -> ()
    %cst_21 = arith.constant dense<0.000000e+00> : vector<2x8x8xf32>
    %73 = tpu.matmul %72, %57, %cst_21 {dimension_numbers = #tpu.dot_dimension_numbers<[2], [1], [1], [2], [0, 0, 0, 1, 1, 2], [0], [0]>} : vector<2x8x8xbf16>, vector<2x8x8xbf16>, vector<2x8x8xf32> -> vector<2x8x8xf32>
    "tpu.trace_stop"() : () -> ()
    %74 = vector.extract_strided_slice %47 {offsets = [0, 0, 8], sizes = [2, 8, 8], strides = [1, 1, 1]} : vector<2x8x32xf32> to vector<2x8x8xf32>
    %75 = arith.truncf %74 : vector<2x8x8xf32> to vector<2x8x8xbf16>
    %76 = vector.extract_strided_slice %49 {offsets = [0, 0, 8], sizes = [2, 8, 8], strides = [1, 1, 1]} : vector<2x8x32xf32> to vector<2x8x8xf32>
    %77 = arith.truncf %76 : vector<2x8x8xf32> to vector<2x8x8xbf16>
    %78 = vector.extract_strided_slice %52 {offsets = [0, 0, 8], sizes = [2, 8, 8], strides = [1, 1, 1]} : vector<2x8x32xbf16> to vector<2x8x8xbf16>
    "tpu.trace_start"() <{level = 10 : i32, message = "bqd,bkd->bqk"}> : () -> ()
    %cst_22 = arith.constant dense<0.000000e+00> : vector<2x8x8xf32>
    %79 = tpu.matmul %75, %77, %cst_22 {dimension_numbers = #tpu.dot_dimension_numbers<[2], [2], [1], [1], [0, 0, 0, 1, 1, 1], [0], [0]>} : vector<2x8x8xbf16>, vector<2x8x8xbf16>, vector<2x8x8xf32> -> vector<2x8x8xf32>
    "tpu.trace_stop"() : () -> ()
    %80 = vector.shape_cast %15 : vector<8x8xf32> to vector<1x8x8xf32>
    %81 = vector.broadcast %80 : vector<1x8x8xf32> to vector<2x8x8xf32>
    %82 = arith.addf %79, %81 : vector<2x8x8xf32>
    %cst_23 = arith.constant dense<0xFF800000> : vector<2x8xf32>
    %83 = vector.multi_reduction <maximumf>, %82, %cst_23 [2] : vector<2x8x8xf32> to vector<2x8xf32>
    %84 = vector.shape_cast %83 : vector<2x8xf32> to vector<2x8x1xf32>
    %85 = vector.broadcast %84 : vector<2x8x1xf32> to vector<2x8x8xf32>
    %86 = arith.subf %82, %85 : vector<2x8x8xf32>
    %87 = math.exp %86 : vector<2x8x8xf32>
    %cst_24 = arith.constant dense<0.000000e+00> : vector<2x8xf32>
    %88 = vector.multi_reduction <add>, %87, %cst_24 [2] : vector<2x8x8xf32> to vector<2x8xf32>
    %89 = vector.shape_cast %88 : vector<2x8xf32> to vector<2x8x1xf32>
    %90 = tpu.reciprocal %89 {approx = true} : vector<2x8x1xf32> -> vector<2x8x1xf32>
    %91 = vector.broadcast %90 : vector<2x8x1xf32> to vector<2x8x8xf32>
    %92 = arith.mulf %87, %91 : vector<2x8x8xf32>
    %93 = arith.truncf %92 : vector<2x8x8xf32> to vector<2x8x8xbf16>
    "tpu.trace_start"() <{level = 10 : i32, message = "bqk,bkd->bqd"}> : () -> ()
    %cst_25 = arith.constant dense<0.000000e+00> : vector<2x8x8xf32>
    %94 = tpu.matmul %93, %78, %cst_25 {dimension_numbers = #tpu.dot_dimension_numbers<[2], [1], [1], [2], [0, 0, 0, 1, 1, 2], [0], [0]>} : vector<2x8x8xbf16>, vector<2x8x8xbf16>, vector<2x8x8xf32> -> vector<2x8x8xf32>
    "tpu.trace_stop"() : () -> ()
    %95 = vector.extract_strided_slice %47 {offsets = [0, 0, 16], sizes = [2, 8, 8], strides = [1, 1, 1]} : vector<2x8x32xf32> to vector<2x8x8xf32>
    %96 = arith.truncf %95 : vector<2x8x8xf32> to vector<2x8x8xbf16>
    %97 = vector.extract_strided_slice %49 {offsets = [0, 0, 16], sizes = [2, 8, 8], strides = [1, 1, 1]} : vector<2x8x32xf32> to vector<2x8x8xf32>
    %98 = arith.truncf %97 : vector<2x8x8xf32> to vector<2x8x8xbf16>
    %99 = vector.extract_strided_slice %52 {offsets = [0, 0, 16], sizes = [2, 8, 8], strides = [1, 1, 1]} : vector<2x8x32xbf16> to vector<2x8x8xbf16>
    "tpu.trace_start"() <{level = 10 : i32, message = "bqd,bkd->bqk"}> : () -> ()
    %cst_26 = arith.constant dense<0.000000e+00> : vector<2x8x8xf32>
    %100 = tpu.matmul %96, %98, %cst_26 {dimension_numbers = #tpu.dot_dimension_numbers<[2], [2], [1], [1], [0, 0, 0, 1, 1, 1], [0], [0]>} : vector<2x8x8xbf16>, vector<2x8x8xbf16>, vector<2x8x8xf32> -> vector<2x8x8xf32>
    "tpu.trace_stop"() : () -> ()
    %101 = vector.shape_cast %15 : vector<8x8xf32> to vector<1x8x8xf32>
    %102 = vector.broadcast %101 : vector<1x8x8xf32> to vector<2x8x8xf32>
    %103 = arith.addf %100, %102 : vector<2x8x8xf32>
    %cst_27 = arith.constant dense<0xFF800000> : vector<2x8xf32>
    %104 = vector.multi_reduction <maximumf>, %103, %cst_27 [2] : vector<2x8x8xf32> to vector<2x8xf32>
    %105 = vector.shape_cast %104 : vector<2x8xf32> to vector<2x8x1xf32>
    %106 = vector.broadcast %105 : vector<2x8x1xf32> to vector<2x8x8xf32>
    %107 = arith.subf %103, %106 : vector<2x8x8xf32>
    %108 = math.exp %107 : vector<2x8x8xf32>
    %cst_28 = arith.constant dense<0.000000e+00> : vector<2x8xf32>
    %109 = vector.multi_reduction <add>, %108, %cst_28 [2] : vector<2x8x8xf32> to vector<2x8xf32>
    %110 = vector.shape_cast %109 : vector<2x8xf32> to vector<2x8x1xf32>
    %111 = tpu.reciprocal %110 {approx = true} : vector<2x8x1xf32> -> vector<2x8x1xf32>
    %112 = vector.broadcast %111 : vector<2x8x1xf32> to vector<2x8x8xf32>
    %113 = arith.mulf %108, %112 : vector<2x8x8xf32>
    %114 = arith.truncf %113 : vector<2x8x8xf32> to vector<2x8x8xbf16>
    "tpu.trace_start"() <{level = 10 : i32, message = "bqk,bkd->bqd"}> : () -> ()
    %cst_29 = arith.constant dense<0.000000e+00> : vector<2x8x8xf32>
    %115 = tpu.matmul %114, %99, %cst_29 {dimension_numbers = #tpu.dot_dimension_numbers<[2], [1], [1], [2], [0, 0, 0, 1, 1, 2], [0], [0]>} : vector<2x8x8xbf16>, vector<2x8x8xbf16>, vector<2x8x8xf32> -> vector<2x8x8xf32>
    "tpu.trace_stop"() : () -> ()
    %116 = vector.extract_strided_slice %47 {offsets = [0, 0, 24], sizes = [2, 8, 8], strides = [1, 1, 1]} : vector<2x8x32xf32> to vector<2x8x8xf32>
    %117 = arith.truncf %116 : vector<2x8x8xf32> to vector<2x8x8xbf16>
    %118 = vector.extract_strided_slice %49 {offsets = [0, 0, 24], sizes = [2, 8, 8], strides = [1, 1, 1]} : vector<2x8x32xf32> to vector<2x8x8xf32>
    %119 = arith.truncf %118 : vector<2x8x8xf32> to vector<2x8x8xbf16>
    %120 = vector.extract_strided_slice %52 {offsets = [0, 0, 24], sizes = [2, 8, 8], strides = [1, 1, 1]} : vector<2x8x32xbf16> to vector<2x8x8xbf16>
    "tpu.trace_start"() <{level = 10 : i32, message = "bqd,bkd->bqk"}> : () -> ()
    %cst_30 = arith.constant dense<0.000000e+00> : vector<2x8x8xf32>
    %121 = tpu.matmul %117, %119, %cst_30 {dimension_numbers = #tpu.dot_dimension_numbers<[2], [2], [1], [1], [0, 0, 0, 1, 1, 1], [0], [0]>} : vector<2x8x8xbf16>, vector<2x8x8xbf16>, vector<2x8x8xf32> -> vector<2x8x8xf32>
    "tpu.trace_stop"() : () -> ()
    %122 = vector.shape_cast %15 : vector<8x8xf32> to vector<1x8x8xf32>
    %123 = vector.broadcast %122 : vector<1x8x8xf32> to vector<2x8x8xf32>
    %124 = arith.addf %121, %123 : vector<2x8x8xf32>
    %cst_31 = arith.constant dense<0xFF800000> : vector<2x8xf32>
    %125 = vector.multi_reduction <maximumf>, %124, %cst_31 [2] : vector<2x8x8xf32> to vector<2x8xf32>
    %126 = vector.shape_cast %125 : vector<2x8xf32> to vector<2x8x1xf32>
    %127 = vector.broadcast %126 : vector<2x8x1xf32> to vector<2x8x8xf32>
    %128 = arith.subf %124, %127 : vector<2x8x8xf32>
    %129 = math.exp %128 : vector<2x8x8xf32>
    %cst_32 = arith.constant dense<0.000000e+00> : vector<2x8xf32>
    %130 = vector.multi_reduction <add>, %129, %cst_32 [2] : vector<2x8x8xf32> to vector<2x8xf32>
    %131 = vector.shape_cast %130 : vector<2x8xf32> to vector<2x8x1xf32>
    %132 = tpu.reciprocal %131 {approx = true} : vector<2x8x1xf32> -> vector<2x8x1xf32>
    %133 = vector.broadcast %132 : vector<2x8x1xf32> to vector<2x8x8xf32>
    %134 = arith.mulf %129, %133 : vector<2x8x8xf32>
    %135 = arith.truncf %134 : vector<2x8x8xf32> to vector<2x8x8xbf16>
    "tpu.trace_start"() <{level = 10 : i32, message = "bqk,bkd->bqd"}> : () -> ()
    %cst_33 = arith.constant dense<0.000000e+00> : vector<2x8x8xf32>
    %136 = tpu.matmul %135, %120, %cst_33 {dimension_numbers = #tpu.dot_dimension_numbers<[2], [1], [1], [2], [0, 0, 0, 1, 1, 2], [0], [0]>} : vector<2x8x8xbf16>, vector<2x8x8xbf16>, vector<2x8x8xf32> -> vector<2x8x8xf32>
    "tpu.trace_stop"() : () -> ()
    %137 = tpu.concatenate %73, %94, %115, %136 in 2 : vector<2x8x8xf32>, vector<2x8x8xf32>, vector<2x8x8xf32>, vector<2x8x8xf32> -> vector<2x8x32xf32>
    %138 = vector.shape_cast %137 : vector<2x8x32xf32> to vector<16x32xf32>
    %139 = arith.truncf %138 : vector<16x32xf32> to vector<16x32xbf16>
    %c0_34 = arith.constant 0 : index
    %c0_35 = arith.constant 0 : index
    %c0_36 = arith.constant 0 : index
    %140 = vector.load %arg4[%c0_34, %c0_35, %c0_36] : memref<1x32x32xbf16, #tpu.memory_space<vmem>>, vector<1x32x32xbf16>
    %141 = vector.shape_cast %140 : vector<1x32x32xbf16> to vector<32x32xbf16>
    %cst_37 = arith.constant dense<0.000000e+00> : vector<16x32xf32>
    %142 = tpu.matmul %139, %141, %cst_37 {dimension_numbers = #tpu.dot_dimension_numbers<[1], [0], [0], [1], [0, 0, 1, 1], [], []>} : vector<16x32xbf16>, vector<32x32xbf16>, vector<16x32xf32> -> vector<16x32xf32>
    %c0_38 = arith.constant 0 : index
    %c0_39 = arith.constant 0 : index
    %c0_40 = arith.constant 0 : index
    %143 = vector.load %arg5[%c0_38, %c0_39, %c0_40] : memref<1x1x32xf32, #tpu.memory_space<vmem>>, vector<1x1x32xf32>
    %144 = vector.shape_cast %143 : vector<1x1x32xf32> to vector<1x32xf32>
    %145 = vector.broadcast %144 : vector<1x32xf32> to vector<16x32xf32>
    %146 = arith.addf %142, %145 : vector<16x32xf32>
    %147 = arith.addf %3, %146 : vector<16x32xf32>
    %cst_41 = arith.constant dense<0.000000e+00> : vector<16xf32>
    %148 = vector.multi_reduction <add>, %147, %cst_41 [1] : vector<16x32xf32> to vector<16xf32>
    %149 = vector.shape_cast %148 : vector<16xf32> to vector<16x1xf32>
    %cst_42 = arith.constant 3.200000e+01 : f32
    %150 = vector.broadcast %cst_42 : f32 to vector<16x1xf32>
    %151 = arith.divf %149, %150 : vector<16x1xf32>
    %152 = vector.broadcast %151 : vector<16x1xf32> to vector<16x32xf32>
    %153 = arith.subf %147, %152 : vector<16x32xf32>
    %154 = arith.mulf %153, %153 : vector<16x32xf32>
    %cst_43 = arith.constant dense<0.000000e+00> : vector<16xf32>
    %155 = vector.multi_reduction <add>, %154, %cst_43 [1] : vector<16x32xf32> to vector<16xf32>
    %156 = vector.shape_cast %155 : vector<16xf32> to vector<16x1xf32>
    %cst_44 = arith.constant 3.200000e+01 : f32
    %157 = vector.broadcast %cst_44 : f32 to vector<16x1xf32>
    %158 = arith.divf %156, %157 : vector<16x1xf32>
    %159 = vector.broadcast %151 : vector<16x1xf32> to vector<16x32xf32>
    %160 = arith.subf %147, %159 : vector<16x32xf32>
    %cst_45 = arith.constant 9.99999974E-6 : f32
    %161 = vector.broadcast %cst_45 : f32 to vector<16x1xf32>
    %162 = arith.addf %158, %161 : vector<16x1xf32>
    %163 = math.rsqrt %162 : vector<16x1xf32>
    %164 = vector.broadcast %163 : vector<16x1xf32> to vector<16x32xf32>
    %165 = arith.mulf %160, %164 : vector<16x32xf32>
    %166 = vector.broadcast %8 : vector<1x32xf32> to vector<16x32xf32>
    %167 = arith.mulf %165, %166 : vector<16x32xf32>
    %168 = vector.broadcast %9 : vector<1x32xf32> to vector<16x32xf32>
    %169 = arith.addf %167, %168 : vector<16x32xf32>
    %170 = arith.truncf %169 : vector<16x32xf32> to vector<16x32xbf16>
    %c0_46 = arith.constant 0 : index
    %c0_47 = arith.constant 0 : index
    %c0_48 = arith.constant 0 : index
    %171 = vector.load %arg6[%c0_46, %c0_47, %c0_48] : memref<1x32x128xbf16, #tpu.memory_space<vmem>>, vector<1x32x128xbf16>
    %172 = vector.shape_cast %171 : vector<1x32x128xbf16> to vector<32x128xbf16>
    %cst_49 = arith.constant dense<0.000000e+00> : vector<16x128xf32>
    %173 = tpu.matmul %170, %172, %cst_49 {dimension_numbers = #tpu.dot_dimension_numbers<[1], [0], [0], [1], [0, 0, 1, 1], [], []>} : vector<16x32xbf16>, vector<32x128xbf16>, vector<16x128xf32> -> vector<16x128xf32>
    %c0_50 = arith.constant 0 : index
    %c0_51 = arith.constant 0 : index
    %c0_52 = arith.constant 0 : index
    %174 = vector.load %arg7[%c0_50, %c0_51, %c0_52] : memref<1x1x128xf32, #tpu.memory_space<vmem>>, vector<1x1x128xf32>
    %175 = vector.shape_cast %174 : vector<1x1x128xf32> to vector<1x128xf32>
    %176 = vector.broadcast %175 : vector<1x128xf32> to vector<16x128xf32>
    %177 = arith.addf %173, %176 : vector<16x128xf32>
    %cst_53 = arith.constant 1.702000e+00 : f32
    %178 = vector.broadcast %cst_53 : f32 to vector<16x128xf32>
    %179 = arith.mulf %178, %177 : vector<16x128xf32>
    %180 = arith.negf %179 : vector<16x128xf32>
    %181 = math.exp %180 : vector<16x128xf32>
    %cst_54 = arith.constant 1.000000e+00 : f32
    %182 = vector.broadcast %cst_54 : f32 to vector<16x128xf32>
    %183 = arith.addf %182, %181 : vector<16x128xf32>
    %184 = arith.divf %182, %183 : vector<16x128xf32>
    %185 = arith.mulf %177, %184 : vector<16x128xf32>
    %186 = arith.truncf %185 : vector<16x128xf32> to vector<16x128xbf16>
    %c0_55 = arith.constant 0 : index
    %c0_56 = arith.constant 0 : index
    %c0_57 = arith.constant 0 : index
    %187 = vector.load %arg8[%c0_55, %c0_56, %c0_57] : memref<1x128x32xbf16, #tpu.memory_space<vmem>>, vector<1x128x32xbf16>
    %188 = vector.shape_cast %187 : vector<1x128x32xbf16> to vector<128x32xbf16>
    %cst_58 = arith.constant dense<0.000000e+00> : vector<16x32xf32>
    %189 = tpu.matmul %186, %188, %cst_58 {dimension_numbers = #tpu.dot_dimension_numbers<[1], [0], [0], [1], [0, 0, 1, 1], [], []>} : vector<16x128xbf16>, vector<128x32xbf16>, vector<16x32xf32> -> vector<16x32xf32>
    %c0_59 = arith.constant 0 : index
    %c0_60 = arith.constant 0 : index
    %c0_61 = arith.constant 0 : index
    %190 = vector.load %arg9[%c0_59, %c0_60, %c0_61] : memref<1x1x32xf32, #tpu.memory_space<vmem>>, vector<1x1x32xf32>
    %191 = vector.shape_cast %190 : vector<1x1x32xf32> to vector<1x32xf32>
    %192 = vector.broadcast %191 : vector<1x32xf32> to vector<16x32xf32>
    %193 = arith.addf %189, %192 : vector<16x32xf32>
    %194 = arith.addf %147, %193 : vector<16x32xf32>
    %c0_62 = arith.constant 0 : index
    %c0_63 = arith.constant 0 : index
    %195 = vector.load %arg13[%c0_62, %c0_63] : memref<16x32xf32, #tpu.memory_space<vmem>>, vector<16x32xf32>
    tpu.vector_store %arg13[%c0_62, %c0_63], %194 {strides = array<i32>} : memref<16x32xf32, #tpu.memory_space<vmem>>, vector<16x32xf32>,
    %c1_i32 = arith.constant 1 : i32
    %196 = arith.cmpi eq, %arg0, %c1_i32 : i32
    %197 = arith.extui %196 : i1 to i32
    %c0_i32_64 = arith.constant 0 : i32
    %198 = arith.cmpi ne, %197, %c0_i32_64 : i32
    scf.if %198 {
      %c0_65 = arith.constant 0 : index
      %c0_66 = arith.constant 0 : index
      %199 = vector.load %arg11[%c0_65, %c0_66] : memref<2x32xf32, #tpu.memory_space<vmem>>, vector<2x32xf32>
      %200 = vector.extract_strided_slice %199 {offsets = [0, 0], sizes = [1, 32], strides = [1, 1]} : vector<2x32xf32> to vector<1x32xf32>
      %201 = vector.extract_strided_slice %199 {offsets = [1, 0], sizes = [1, 32], strides = [1, 1]} : vector<2x32xf32> to vector<1x32xf32>
      %cst_67 = arith.constant dense<0.000000e+00> : vector<16xf32>
      %202 = vector.multi_reduction <add>, %194, %cst_67 [1] : vector<16x32xf32> to vector<16xf32>
      %203 = vector.shape_cast %202 : vector<16xf32> to vector<16x1xf32>
      %cst_68 = arith.constant 3.200000e+01 : f32
      %204 = vector.broadcast %cst_68 : f32 to vector<16x1xf32>
      %205 = arith.divf %203, %204 : vector<16x1xf32>
      %206 = vector.broadcast %205 : vector<16x1xf32> to vector<16x32xf32>
      %207 = arith.subf %194, %206 : vector<16x32xf32>
      %208 = arith.mulf %207, %207 : vector<16x32xf32>
      %cst_69 = arith.constant dense<0.000000e+00> : vector<16xf32>
      %209 = vector.multi_reduction <add>, %208, %cst_69 [1] : vector<16x32xf32> to vector<16xf32>
      %210 = vector.shape_cast %209 : vector<16xf32> to vector<16x1xf32>
      %cst_70 = arith.constant 3.200000e+01 : f32
      %211 = vector.broadcast %cst_70 : f32 to vector<16x1xf32>
      %212 = arith.divf %210, %211 : vector<16x1xf32>
      %213 = vector.broadcast %205 : vector<16x1xf32> to vector<16x32xf32>
      %214 = arith.subf %194, %213 : vector<16x32xf32>
      %cst_71 = arith.constant 9.99999974E-6 : f32
      %215 = vector.broadcast %cst_71 : f32 to vector<16x1xf32>
      %216 = arith.addf %212, %215 : vector<16x1xf32>
      %217 = math.rsqrt %216 : vector<16x1xf32>
      %218 = vector.broadcast %217 : vector<16x1xf32> to vector<16x32xf32>
      %219 = arith.mulf %214, %218 : vector<16x32xf32>
      %220 = vector.broadcast %200 : vector<1x32xf32> to vector<16x32xf32>
      %221 = arith.mulf %219, %220 : vector<16x32xf32>
      %222 = vector.broadcast %201 : vector<1x32xf32> to vector<16x32xf32>
      %223 = arith.addf %221, %222 : vector<16x32xf32>
      %c0_72 = arith.constant 0 : index
      %c0_73 = arith.constant 0 : index
      %224 = vector.load %arg12[%c0_72, %c0_73] : memref<16x32xf32, #tpu.memory_space<vmem>>, vector<16x32xf32>
      tpu.vector_store %arg12[%c0_72, %c0_73], %223 {strides = array<i32>} : memref<16x32xf32, #tpu.memory_space<vmem>>, vector<16x32xf32>,
    } else {
    }
    return
  }
  func.func @transform_0(%arg0: i32) -> (i32, i32) {
    %c0_i32 = arith.constant 0 : i32
    %c0_i32_0 = arith.constant 0 : i32
    %c0_i32_1 = arith.constant 0 : i32
    return %c0_i32, %c0_i32_0 : i32, i32
  }
  func.func @transform_1(%arg0: i32) -> (i32, i32, i32) {
    %c0_i32 = arith.constant 0 : i32
    %c0_i32_0 = arith.constant 0 : i32
    %c0_i32_1 = arith.constant 0 : i32
    return %arg0, %c0_i32, %c0_i32_0 : i32, i32, i32
  }
  func.func @transform_2(%arg0: i32) -> (i32, i32, i32) {
    %c0_i32 = arith.constant 0 : i32
    %c0_i32_0 = arith.constant 0 : i32
    %c0_i32_1 = arith.constant 0 : i32
    return %arg0, %c0_i32, %c0_i32_0 : i32, i32, i32
  }
  func.func @transform_3(%arg0: i32) -> (i32, i32, i32) {
    %c0_i32 = arith.constant 0 : i32
    %c0_i32_0 = arith.constant 0 : i32
    %c0_i32_1 = arith.constant 0 : i32
    return %arg0, %c0_i32, %c0_i32_0 : i32, i32, i32
  }
  func.func @transform_4(%arg0: i32) -> (i32, i32, i32) {
    %c0_i32 = arith.constant 0 : i32
    %c0_i32_0 = arith.constant 0 : i32
    %c0_i32_1 = arith.constant 0 : i32
    return %arg0, %c0_i32, %c0_i32_0 : i32, i32, i32
  }
  func.func @transform_5(%arg0: i32) -> (i32, i32, i32) {
    %c0_i32 = arith.constant 0 : i32
    %c0_i32_0 = arith.constant 0 : i32
    %c0_i32_1 = arith.constant 0 : i32
    return %arg0, %c0_i32, %c0_i32_0 : i32, i32, i32
  }
  func.func @transform_6(%arg0: i32) -> (i32, i32, i32) {
    %c0_i32 = arith.constant 0 : i32
    %c0_i32_0 = arith.constant 0 : i32
    %c0_i32_1 = arith.constant 0 : i32
    return %arg0, %c0_i32, %c0_i32_0 : i32, i32, i32
  }
  func.func @transform_7(%arg0: i32) -> (i32, i32, i32) {
    %c0_i32 = arith.constant 0 : i32
    %c0_i32_0 = arith.constant 0 : i32
    %c0_i32_1 = arith.constant 0 : i32
    return %arg0, %c0_i32, %c0_i32_0 : i32, i32, i32
  }
  func.func @transform_8(%arg0: i32) -> (i32, i32, i32) {
    %c0_i32 = arith.constant 0 : i32
    %c0_i32_0 = arith.constant 0 : i32
    %c0_i32_1 = arith.constant 0 : i32
    return %arg0, %c0_i32, %c0_i32_0 : i32, i32, i32
  }
  func.func @transform_9(%arg0: i32) -> (i32, i32, i32) {
    %c0_i32 = arith.constant 0 : i32
    %c0_i32_0 = arith.constant 0 : i32
    %c0_i32_1 = arith.constant 0 : i32
    return %arg0, %c0_i32, %c0_i32_0 : i32, i32, i32
  }
  func.func @transform_10(%arg0: i32) -> (i32, i32) {
    %c0_i32 = arith.constant 0 : i32
    %c0_i32_0 = arith.constant 0 : i32
    %c0_i32_1 = arith.constant 0 : i32
    return %c0_i32, %c0_i32_0 : i32, i32
  }
  func.func @transform_11(%arg0: i32) -> (i32, i32) {
    %c0_i32 = arith.constant 0 : i32
    %c0_i32_0 = arith.constant 0 : i32
    %c0_i32_1 = arith.constant 0 : i32
    return %c0_i32, %c0_i32_0 : i32, i32
  }
}

</mosaic_0001>

<bundles_post_ra>
// kernel: clip_text_embedder_forward.1
= control target key start
LH: loop header
LB: loop body
LE: loop exit
PB: predicated region body
PF: predicated region fallthrough
CT: control target
= control target key end

     0   :  { %s2868_s0 = inlined_call_operand.vmem [shape: f32[16,32], index: 0, kind: input, shape index: {}]   ;;  %s2869_s1 = inlined_call_operand.vmem [shape: bf16[2,32,96], index: 1, kind: input, shape index: {}]   ;;  %s2870_s2 = inlined_call_operand.vmem [shape: f32[2,1,96], index: 2, kind: input, shape index: {}]   ;;  %s2871_s3 = inlined_call_operand.vmem [shape: bf16[2,32,32], index: 3, kind: input, shape index: {}]   ;;  %s2872_s4 = inlined_call_operand.vmem [shape: f32[2,1,32], index: 4, kind: input, shape index: {}]   ;;  %s2873_s5 = inlined_call_operand.vmem [shape: bf16[2,32,128], index: 5, kind: input, shape index: {}]   ;;  %s2874_s6 = inlined_call_operand.vmem [shape: f32[2,1,128], index: 6, kind: input, shape index: {}]   ;;  %s2875_s7 = inlined_call_operand.vmem [shape: bf16[2,128,32], index: 7, kind: input, shape index: {}]   ;;  %s2876_s8 = inlined_call_operand.vmem [shape: f32[2,1,32], index: 8, kind: input, shape index: {}]   ;;  %s2877_s9 = inlined_call_operand.vmem [shape: f32[2,4,32], index: 9, kind: input, shape index: {}]   ;;  %s2878_s10 = inlined_call_operand.vmem [shape: f32[2,32], index: 10, kind: input, shape index: {}]   ;;  %s2879_s11 = inlined_call_operand.hbm [shape: f32[16,32], index: 11, kind: output, shape index: {}]  }
   0x1   :  { %2881 = sst [smem:[#allocation7_spill]] %s2869_s1 }
   0x2   :  { %2882 = sst [smem:[#allocation8_spill]] %s2871_s3 }
   0x3   :  { %16 = vsyncpa [#allocation4], 0  ;;  %s2514_s17 = smov 0  }
   0x4 LB: > { %2883 = sst [smem:[#allocation6_spill]] %s2433_s17  ;;  %s2520_s18 = sadd.s32 4294967295, %s2433_s17   ;;  %s2433_s17 = sphi %s2514_s17, %s22_s17  }
   0x5   : > { %p2036_p0 = scmp.ge.s32.totalorder %s2433_s17, 1  ;;  %p404_p1 = scmp.lt.s32.totalorder %s2433_s17, 3 }
   0x7   : > { %p405_p2 = pnand %p2036_p0, %p404_p1 }
   0x8   : > { %p470_p3 = scmp.lt.s32.totalorder (!%p405_p2), %s2520_s18, 1  ;;  %s2884_s1 = sld [smem:[#allocation7_spill]] (!%p405_p2) }
   0x9   : > { %408 = sbr.rel (%p405_p2) target bundleno = 4330 (0x10ea), region = 64  ;;  %s2885_s3 = sld [smem:[#allocation8_spill]] (!%p405_p2) }
   0xa   : > { %p2046_p4 = scmp.ne.s32.totalorder (!%p405_p2), %s2520_s18, 0 }
   0xe   : > { %s2526_s19 = scalar_select %p470_p3, %s2520_s18, 1 }
  0x10   : > { %s2091_s20 = sshll.u32 %s2526_s19, 4  ;;  %s493_s24 = scalar_lea.vmem %s2874_s6, %s2526_s19 }
  0x11   : > { %s2536_s26 = scalar_lea.vmem %s2884_s1, %s2091_s20  ;;  %s2541_s29 = scalar_lea.vmem %s2885_s3, %s2091_s20 }
  0x12   : > { %s2550_s16 = scalar_lea.vmem %s2873_s5, %s2091_s20  ;;  %s2094_s25 = sshll.u32 %s2526_s19, 6 }
  0x13   : > { %s2560_s27 = scalar_lea.vmem %s2875_s7, %s2094_s25  ;;  %s501_s30 = scalar_lea.vmem %s2876_s8, %s2526_s19 }
  0x14   : > { %s2045_s12 = sshll.u32 %s2526_s19, 2  ;;  %510 = sbr.rel (%p2046_p4) target bundleno = 27 (0x1b), region = 68 }
  0x15   : > { %s2570_s20 = scalar_lea.vmem %s2877_s9, %s2045_s12 }
  0x19   : > { %v511_v0 = vld [vmem:[%s2868_s0] sm:$0xff]  ;;  %vm513_vm0 = vcmask 261120   ;;  %v512_v1 = vld [vmem:[%s2868_s0 + $0x8] sm:$0xff] }
  0x1a   : > { %514 = vst.msk [vmem:[#allocation2] sm:$0xff] %vm513_vm0, %v511_v0  ;;  %515 = vst.msk [vmem:[#allocation2 + $0x8] sm:$0xff] %vm513_vm0, %v512_v1 }
  0x1b PF: > { %vm525_vm1 = vcmask 261120   ;;  %v2333_v16 = vld [vmem:[%s2536_s26 + $0x8] sm:$0xff]   ;;  %v2435_v17 = vmov 0.0   ;;  %vm2436_vm2 = vmmov 0   ;;  %v2334_v18 = vld [vmem:[%s2536_s26] sm:$0xff]   ;;  %v519_v25 = vlaneseq  ;;  %s2886_s26 = scalar_lea.vmem %s2870_s2, %s2526_s19  ;;  %s2437_s13 = smov 96  }
  0x1c   : > { %2145 = vmatprep.subr.bf16.mxu0 %v2435_v17  ;;  %2149 = vmatprep.mubr.msk.bf16.mxu0 %vm2436_vm2, %v2435_v17  ;;  %v2605_v28 = vld [vmem:[%s2570_s20] sm:$0xf]  ;;  %vm638_vm3 = vcmask 64512   ;;  %v2438_v55 = vmov -1e+09   ;;  %s2439_s21 = smov 64  }
  0x1d   : > { %2146 = vmatpush3.bf16.msra.mxu0 %v2333_v16  ;;  %2165 = vmatprep.subr.bf16.mxu1 %v2435_v17  ;;  %v2601_v26 = vshrl.u32 %v519_v25, 7  ;;  %v2047_v41 = vld [vmem:[%s2886_s26] ss:$0 sm:$0xff]  ;;  %v522_v54 = vand.u32 127, %v519_v25  ;;  %s2440_s22 = smov 88   ;;  %vm763_vm5 = vcmask 1043456  }
  0x1e   : > { %2147 = vmatprep.subr.bf16.mxu0 %v2435_v17  ;;  %2167 = vmatprep.mubr.msk.bf16.mxu1 %vm2436_vm2, %v2435_v17  ;;  %s2441_s25 = smov 120   ;;  %s2442_s28 = smov 56   ;;  %vm1541_vm6 = vcmask 130048   ;;  %vm1544_vm7 = vcmask 195584  }
  0x1f   : > { %v555_v27 = vsub.s32 0, %v2601_v26  ;;  %v561_v32 = vsub.s32 1, %v2601_v26  ;;  %vm523_vm4 = vcmp.le.s32.totalorder %v522_v54, %v2601_v26  ;;  %s2443_s12 = smov 80   ;;  %s2444_s20 = smov 112  }
  0x20   : > { %v2641_v56 = vsel %vm523_vm4, 0.0, %v2438_v55  ;;  %s2445_s14 = smov 48   ;;  %s2446_s15 = smov 72  }
  0x21   : > { %v2579_v2 = vld [vmem:[#allocation2] sm:$0xff]  ;;  %v2581_v3 = vld [vmem:[#allocation2 + $0x8] sm:$0xff]  ;;  %2148 = vmatpush3.bf16.msra.mxu0 %v2334_v18  ;;  %v556_v31 = vrot.slane %v2605_v28, %v555_v27  ;;  %v562_v36 = vrot.slane %v2605_v28, %v561_v32  ;;  %s2447_s1 = smov 104   ;;  %s2448_s23 = smov 40  }
  0x22   : > { %v526_v4 = vsel %vm525_vm1, %v2579_v2, 0.0  ;;  %v529_v5 = vsel %vm525_vm1, %v2581_v3, 0.0  ;;  %2153 = vmatprep.subr.bf16.mxu0 %v2435_v17  ;;  %s2449_s3 = smov 8   ;;  %s2450_s17 = smov 16  }
  0x23   : > { %527 = vadd.xlane.f32.xlu0 %v526_v4  ;;  %s2451_s26 = smov 24   ;;  %p2086_p5 = scmp.ne.s32.totalorder %s2520_s18, 1 }
  0x27   : > { %530 = vadd.xlane.f32.xlu0 %v529_v5 }
  0xac   : > { %v528_v6 = vpop.xlane.xlu0 %527 }
  0xad   : > { %v533_v7 = vmul.f32 0.03125, %v528_v6 }
  0xaf   : > { %v535_v8 = vsub.f32 %v2579_v2, %v533_v7 }
  0xb0   : > { %v531_v9 = vpop.xlane.xlu0 %530 }
  0xb1   : > { %v534_v10 = vmul.f32 0.03125, %v531_v9  ;;  %v537_v11 = vmul.f32 %v535_v8, %v535_v8 }
  0xb3   : > { %v536_v12 = vsub.f32 %v2581_v3, %v534_v10  ;;  %v539_v13 = vsel %vm525_vm1, %v537_v11, 0.0 }
  0xb4   : > { %540 = vadd.xlane.f32.xlu1 %v539_v13 }
  0xb5   : > { %v538_v14 = vmul.f32 %v536_v12, %v536_v12 }
  0xb7   : > { %v542_v15 = vsel %vm525_vm1, %v538_v14, 0.0 }
  0xb8   : > { %543 = vadd.xlane.f32.xlu1 %v542_v15 }
 0x13d   : > { %v541_v19 = vpop.xlane.xlu1 %540 }
 0x13e   : > { %v545_v20 = vmul.f32 0.03125, %v541_v19 }
 0x140   : > { %v547_v21 = vadd.f32 1e-05, %v545_v20 }
 0x141   : > { %v544_v22 = vpop.xlane.xlu1 %543 }
 0x142   : > { %2347 = vrsqrt.f32 %v547_v21  ;;  %v546_v23 = vmul.f32 0.03125, %v544_v22 }
 0x144   : > { %v548_v24 = vadd.f32 1e-05, %v546_v23 }
 0x146   : > { %2349 = vrsqrt.f32 %v548_v24 }
 0x14f   : > { %v2348_v29 = vpop.eup %2347 }
 0x150   : > { %v551_v30 = vmul.f32 %v2348_v29, %v535_v8 }
 0x152   : > { %v557_v35 = vmul.f32 %v556_v31, %v551_v30 }
 0x153   : > { %v2350_v33 = vpop.eup %2349 }
 0x154   : > { %v552_v34 = vmul.f32 %v2350_v33, %v536_v12  ;;  %v563_v38 = vadd.f32 %v562_v36, %v557_v35 }
 0x156   : > { %v558_v37 = vmul.f32 %v556_v31, %v552_v34 }
 0x158   : > { %v564_v39 = vadd.f32 %v562_v36, %v558_v37 }
 0x15a   : > { %v565_v40 = vpack.c.bf16 %v564_v39, %v563_v38 }
 0x15c   : > { %2150 = vmatmul.mubr.msk.bf16.vlgmr.msra.gmra.mxu0 %vm525_vm1, %v565_v40 }
 0x15d   : > { %2155 = vmatprep.mubr.msk.bf16.mxu0 %vm2436_vm2, %v2435_v17 }
 0x21c   : > { %v626_v42 = vpop.f32.mrf.mxu0 }
 0x21d   : > { %v627_v43 = vadd.f32 %v2047_v41, %v626_v42 }
 0x21e   : > { %v2151_v44 = vpop.f32.mrf.mxu0 }
 0x21f   : > { %v2622_v45 = vpack.c.bf16 %v627_v43, %v627_v43 }
 0x220   : > { %v629_v46 = vpop.f32.mrf.mxu0 }
 0x221   : > { %v630_v47 = vadd.f32 %v2047_v41, %v629_v46  ;;  %636 = vrot.lane.b32.xlu0 %v2622_v45, %s2437_s13 }
 0x222   : > { %v2152_v48 = vpop.f32.mrf.mxu0 }
 0x223   : > { %v2625_v49 = vpack.c.bf16 %v630_v47, %v630_v47 }
 0x225   : > { %686 = vrot.lane.b32.xlu1 %v2625_v49, %s2437_s13 }
 0x293   : > { %v637_v50 = vpop.permute.xlu0 %636 }
 0x294   : > { %v643_v51 = vsel %vm638_vm3, %v637_v50, 0 }
 0x295   : > { %2154 = vmatpush3.bf16.xpose.msra.mxu0 %v643_v51 }
 0x296   : > { %2159 = vmatprep.subr.bf16.mxu0 %v2435_v17 }
 0x297   : > { %v687_v52 = vpop.permute.xlu1 %686 }
 0x298   : > { %v692_v53 = vsel %vm638_vm3, %v687_v52, 0 }
 0x29c   : > { %2156 = vmatmul.mubr.msk.bf16.vlgmr.msra.gmra.mxu0 %vm638_vm3, %v2622_v45 }
 0x29d   : > { %2160 = vmatpush3.bf16.xpose.msra.mxu0 %v692_v53  ;;  %2161 = vmatprep.mubr.msk.bf16.mxu0 %vm2436_vm2, %v2435_v17 }
 0x29e   : > { %2171 = vmatprep.subr.bf16.mxu0 %v2435_v17 }
 0x2a4   : > { %2162 = vmatmul.mubr.msk.bf16.vlgmr.msra.gmra.mxu0 %vm638_vm3, %v2625_v49 }
 0x2a5   : > { %2173 = vmatprep.mubr.msk.bf16.mxu0 %vm2436_vm2, %v2435_v17 }
 0x35c   : > { %v679_v57 = vpop.f32.mrf.mxu0 }
 0x35d   : > { %v680_v58 = vadd.f32 %v679_v57, %v2641_v56 }
 0x35e   : > { %v2157_v59 = vpop.f32.mrf.mxu0 }
 0x35f   : > { %v734_v60 = vsel %vm638_vm3, %v680_v58, -inf }
 0x360   : > { %735 = vmax.xlane.f32.xlu1 %v734_v60  ;;  %v682_v61 = vpop.f32.mrf.mxu0 }
 0x362   : > { %v2158_v62 = vpop.f32.mrf.mxu0 }
 0x364   : > { %v728_v63 = vpop.f32.mrf.mxu0 }
 0x365   : > { %v729_v0 = vadd.f32 %v728_v63, %v2641_v56 }
 0x366   : > { %v2163_v1 = vpop.f32.mrf.mxu0 }
 0x367   : > { %v737_v4 = vsel %vm638_vm3, %v729_v0, -inf }
 0x368   : > { %738 = vmax.xlane.f32.xlu0 %v737_v4  ;;  %v731_v5 = vpop.f32.mrf.mxu0 }
 0x36a   : > { %v2164_v6 = vpop.f32.mrf.mxu0 }
 0x371   : > { %807 = vrot.lane.b32.xlu1 %v2625_v49, %s2439_s21 }
 0x375   : > { %857 = vrot.lane.b32.xlu1 %v2622_v45, %s2440_s22 }
 0x3e9   : > { %v736_v7 = vpop.xlane.xlu1 %735 }
 0x3ea   : > { %v740_v8 = vsub.f32 %v680_v58, %v736_v7 }
 0x3ec   : > { %v742_v9 = vmul.f32 1.442695, %v740_v8 }
 0x3ed   : > { %v808_v10 = vpop.permute.xlu1 %807 }
 0x3ee   : > { %2351 = vpow2.f32 %v742_v9  ;;  %v813_v11 = vsel %vm763_vm5, %v808_v10, 0 }
 0x3ef   : > { %2172 = vmatpush3.bf16.msra.mxu0 %v813_v11 }
 0x3f0   : > { %2183 = vmatprep.subr.bf16.mxu0 %v2435_v17 }
 0x3f1   : > { %v739_v12 = vpop.xlane.xlu0 %738  ;;  %v858_v21 = vpop.permute.xlu1 %857 }
 0x3f2   : > { %v741_v13 = vsub.f32 %v729_v0, %v739_v12  ;;  %v863_v31 = vsel %vm638_vm3, %v858_v21, 0 }
 0x3f4   : > { %v744_v14 = vmul.f32 1.442695, %v741_v13 }
 0x3f6   : > { %2353 = vpow2.f32 %v744_v14 }
 0x3fb   : > { %v2352_v15 = vpop.eup %2351 }
 0x3fc   : > { %v746_v16 = vsel %vm638_vm3, %v2352_v15, 0.0 }
 0x3fd   : > { %747 = vadd.xlane.f32.xlu0 %v746_v16 }
 0x403   : > { %v2354_v18 = vpop.eup %2353 }
 0x404   : > { %v749_v19 = vsel %vm638_vm3, %v2354_v18, 0.0 }
 0x405   : > { %750 = vadd.xlane.f32.xlu1 %v749_v19 }
 0x413   : > { %758 = vrot.lane.b32.xlu0 %v2622_v45, %s2439_s21  ;;  %s2887_s21 = scalar_lea.vmem %s2872_s4, %s2526_s19 }
 0x416   : > { %907 = vrot.lane.b32.xlu1 %v2625_v49, %s2440_s22 }
 0x417   : > { %855 = vrot.lane.b32.xlu0 %v2622_v45, %s2441_s25 }
 0x41a   : > { %905 = vrot.lane.b32.xlu1 %v2625_v49, %s2441_s25 }
 0x486   : > { %v748_v20 = vpop.xlane.xlu0 %747 }
 0x487   : > { %2355 = vrcp.f32 %v748_v20 }
 0x48a   : > { %v759_v22 = vpop.permute.xlu0 %758 }
 0x48b   : > { %v765_v23 = vsel %vm763_vm5, %v759_v22, 0 }
 0x48c   : > { %2166 = vmatpush3.bf16.msra.mxu1 %v765_v23 }
 0x48d   : > { %2177 = vmatprep.subr.bf16.mxu1 %v2435_v17 }
 0x48e   : > { %v751_v24 = vpop.xlane.xlu1 %750  ;;  %v856_v37 = vpop.permute.xlu0 %855 }
 0x48f   : > { %2357 = vrcp.f32 %v751_v24 }
 0x492   : > { %v908_v35 = vpop.permute.xlu1 %907 }
 0x493   : > { %v913_v38 = vsel %vm638_vm3, %v908_v35, 0 }
 0x494   : > { %v2356_v25 = vpop.eup %2355 }
 0x495   : > { %v754_v29 = vmul.f32 %v2356_v25, %v2352_v15 }
 0x496   : > { %v906_v39 = vpop.permute.xlu1 %905 }
 0x497   : > { %v756_v30 = vpack.c.bf16 %v754_v29, %v754_v29 }
 0x499   : > { %2168 = vmatmul.mubr.msk.bf16.vlgmr.msra.gmra.mxu1 %vm638_vm3, %v756_v30 }
 0x49a   : > { %2178 = vmatpush3.bf16.xpose.msra.mxu1 %v863_v31  ;;  %2179 = vmatprep.mubr.msk.bf16.mxu1 %vm2436_vm2, %v2435_v17 }
 0x49b   : > { %2189 = vmatprep.subr.bf16.mxu1 %v2435_v17 }
 0x49c   : > { %v2358_v33 = vpop.eup %2357 }
 0x49d   : > { %v755_v34 = vmul.f32 %v2358_v33, %v2354_v18 }
 0x49f   : > { %v757_v36 = vpack.c.bf16 %v755_v34, %v755_v34 }
 0x4a1   : > { %2174 = vmatmul.mubr.msk.bf16.vlgmr.msra.gmra.mxu0 %vm638_vm3, %v757_v36  ;;  %2180 = vmatmul.mubr.msk.bf16.vlgmr.msra.gmra.mxu1 %vm638_vm3, %v856_v37 }
 0x4a2   : > { %2184 = vmatpush3.bf16.xpose.msra.mxu0 %v913_v38  ;;  %2185 = vmatprep.mubr.msk.bf16.mxu0 %vm2436_vm2, %v2435_v17 }
 0x4a3   : > { %2195 = vmatprep.subr.bf16.mxu0 %v2435_v17  ;;  %2191 = vmatprep.mubr.msk.bf16.mxu1 %vm2436_vm2, %v2435_v17 }
 0x4a9   : > { %2186 = vmatmul.mubr.msk.bf16.vlgmr.msra.gmra.mxu0 %vm638_vm3, %v906_v39 }
 0x4aa   : > { %2197 = vmatprep.mubr.msk.bf16.mxu0 %vm2436_vm2, %v2435_v17 }
 0x559   : > { %v2675_v40 = vpop.f32.mrf.mxu1 }
 0x55b   : > { %v2169_v41 = vpop.f32.mrf.mxu1 }
 0x55d   : > { %v804_v42 = vpop.f32.mrf.mxu1 }
 0x55f   : > { %v2170_v43 = vpop.f32.mrf.mxu1 }
 0x561   : > { %v2677_v44 = vpop.f32.mrf.mxu0  ;;  %v899_v46 = vpop.f32.mrf.mxu1 }
 0x562   : > { %v900_v47 = vadd.f32 %v899_v46, %v2641_v56 }
 0x563   : > { %v2175_v48 = vpop.f32.mrf.mxu0  ;;  %v2181_v50 = vpop.f32.mrf.mxu1 }
 0x564   : > { %v955_v51 = vsel %vm638_vm3, %v900_v47, -inf }
 0x565   : > { %956 = vmax.xlane.f32.xlu0 %v955_v51  ;;  %v852_v52 = vpop.f32.mrf.mxu0  ;;  %v902_v53 = vpop.f32.mrf.mxu1 }
 0x567   : > { %v2176_v54 = vpop.f32.mrf.mxu0  ;;  %v2182_v55 = vpop.f32.mrf.mxu1 }
 0x569   : > { %v949_v57 = vpop.f32.mrf.mxu0 }
 0x56a   : > { %v950_v58 = vadd.f32 %v949_v57, %v2641_v56 }
 0x56b   : > { %v2187_v59 = vpop.f32.mrf.mxu0 }
 0x56c   : > { %v958_v60 = vsel %vm638_vm3, %v950_v58, -inf }
 0x56d   : > { %959 = vmax.xlane.f32.xlu1 %v958_v60  ;;  %v952_v61 = vpop.f32.mrf.mxu0 }
 0x56f   : > { %v2188_v62 = vpop.f32.mrf.mxu0 }
 0x57e   : > { %1027 = vrot.lane.b32.xlu1 %v2625_v49, %s2442_s28 }
 0x582   : > { %1077 = vrot.lane.b32.xlu1 %v2622_v45, %s2443_s12 }
 0x586   : > { %1127 = vrot.lane.b32.xlu1 %v2625_v49, %s2443_s12 }
 0x58a   : > { %1125 = vrot.lane.b32.xlu1 %v2625_v49, %s2444_s20 }
 0x5ee   : > { %v957_v63 = vpop.xlane.xlu0 %956 }
 0x5ef   : > { %v961_v0 = vsub.f32 %v900_v47, %v957_v63 }
 0x5f1   : > { %v963_v1 = vmul.f32 1.442695, %v961_v0 }
 0x5f3   : > { %2359 = vpow2.f32 %v963_v1 }
 0x5f6   : > { %v960_v4 = vpop.xlane.xlu1 %959 }
 0x5f7   : > { %v962_v5 = vsub.f32 %v950_v58, %v960_v4 }
 0x5f9   : > { %v965_v6 = vmul.f32 1.442695, %v962_v5 }
 0x5fa   : > { %v1028_v7 = vpop.permute.xlu1 %1027 }
 0x5fb   : > { %2361 = vpow2.f32 %v965_v6  ;;  %v1033_v8 = vsel %vm763_vm5, %v1028_v7, 0 }
 0x5fc   : > { %2196 = vmatpush3.bf16.msra.mxu0 %v1033_v8 }
 0x5fd   : > { %2207 = vmatprep.subr.bf16.mxu0 %v2435_v17 }
 0x5fe   : > { %v1078_v20 = vpop.permute.xlu1 %1077 }
 0x5ff   : > { %v1083_v22 = vsel %vm638_vm3, %v1078_v20, 0 }
 0x600   : > { %v2360_v9 = vpop.eup %2359 }
 0x601   : > { %v967_v10 = vsel %vm638_vm3, %v2360_v9, 0.0 }
 0x602   : > { %968 = vadd.xlane.f32.xlu0 %v967_v10  ;;  %v1128_v25 = vpop.permute.xlu1 %1127 }
 0x603   : > { %v1133_v31 = vsel %vm638_vm3, %v1128_v25, 0 }
 0x606   : > { %v1126_v33 = vpop.permute.xlu1 %1125 }
 0x608   : > { %v2362_v11 = vpop.eup %2361 }
 0x609   : > { %v970_v12 = vsel %vm638_vm3, %v2362_v11, 0.0 }
 0x60a   : > { %971 = vadd.xlane.f32.xlu0 %v970_v12 }
 0x620   : > { %979 = vrot.lane.b32.xlu0 %v2622_v45, %s2442_s28 }
 0x624   : > { %1075 = vrot.lane.b32.xlu0 %v2622_v45, %s2444_s20 }
 0x68b   : > { %v969_v13 = vpop.xlane.xlu0 %968 }
 0x68c   : > { %2363 = vrcp.f32 %v969_v13 }
 0x693   : > { %v972_v14 = vpop.xlane.xlu0 %971 }
 0x694   : > { %2365 = vrcp.f32 %v972_v14 }
 0x697   : > { %v980_v15 = vpop.permute.xlu0 %979 }
 0x698   : > { %v985_v16 = vsel %vm763_vm5, %v980_v15, 0 }
 0x699   : > { %v2364_v18 = vpop.eup %2363  ;;  %2190 = vmatpush3.bf16.msra.mxu1 %v985_v16 }
 0x69a   : > { %2201 = vmatprep.subr.bf16.mxu1 %v2435_v17  ;;  %v975_v19 = vmul.f32 %v2364_v18, %v2360_v9 }
 0x69b   : > { %v1076_v30 = vpop.permute.xlu0 %1075 }
 0x69c   : > { %v977_v21 = vpack.c.bf16 %v975_v19, %v975_v19 }
 0x69e   : > { %2192 = vmatmul.mubr.msk.bf16.vlgmr.msra.gmra.mxu1 %vm638_vm3, %v977_v21 }
 0x69f   : > { %2202 = vmatpush3.bf16.xpose.msra.mxu1 %v1083_v22  ;;  %2203 = vmatprep.mubr.msk.bf16.mxu1 %vm2436_vm2, %v2435_v17 }
 0x6a0   : > { %2213 = vmatprep.subr.bf16.mxu1 %v2435_v17 }
 0x6a1   : > { %v2366_v23 = vpop.eup %2365 }
 0x6a2   : > { %v976_v24 = vmul.f32 %v2366_v23, %v2362_v11 }
 0x6a4   : > { %v978_v29 = vpack.c.bf16 %v976_v24, %v976_v24 }
 0x6a6   : > { %2198 = vmatmul.mubr.msk.bf16.vlgmr.msra.gmra.mxu0 %vm638_vm3, %v978_v29  ;;  %2204 = vmatmul.mubr.msk.bf16.vlgmr.msra.gmra.mxu1 %vm638_vm3, %v1076_v30 }
 0x6a7   : > { %2208 = vmatpush3.bf16.xpose.msra.mxu0 %v1133_v31  ;;  %2209 = vmatprep.mubr.msk.bf16.mxu0 %vm2436_vm2, %v2435_v17 }
 0x6a8   : > { %2219 = vmatprep.subr.bf16.mxu0 %v2435_v17  ;;  %2215 = vmatprep.mubr.msk.bf16.mxu1 %vm2436_vm2, %v2435_v17 }
 0x6ae   : > { %2210 = vmatmul.mubr.msk.bf16.vlgmr.msra.gmra.mxu0 %vm638_vm3, %v1126_v33 }
 0x6af   : > { %2221 = vmatprep.mubr.msk.bf16.mxu0 %vm2436_vm2, %v2435_v17 }
 0x75e   : > { %v2711_v34 = vpop.f32.mrf.mxu1 }
 0x760   : > { %v2193_v35 = vpop.f32.mrf.mxu1 }
 0x762   : > { %v1024_v36 = vpop.f32.mrf.mxu1 }
 0x764   : > { %v2194_v37 = vpop.f32.mrf.mxu1 }
 0x766   : > { %v2713_v38 = vpop.f32.mrf.mxu0  ;;  %v1119_v39 = vpop.f32.mrf.mxu1 }
 0x767   : > { %v2318_v41 = vpack.i.bf16 %v2713_v38, %v2711_v34  ;;  %v1120_v42 = vadd.f32 %v1119_v39, %v2641_v56 }
 0x768   : > { %v2199_v43 = vpop.f32.mrf.mxu0  ;;  %v2205_v46 = vpop.f32.mrf.mxu1 }
 0x769   : > { %v1175_v47 = vsel %vm638_vm3, %v1120_v42, -inf }
 0x76a   : > { %1176 = vmax.xlane.f32.xlu0 %v1175_v47  ;;  %v1072_v48 = vpop.f32.mrf.mxu0  ;;  %v1122_v50 = vpop.f32.mrf.mxu1 }
 0x76c   : > { %v2200_v51 = vpop.f32.mrf.mxu0  ;;  %v2206_v52 = vpop.f32.mrf.mxu1 }
 0x76e   : > { %v1169_v53 = vpop.f32.mrf.mxu0 }
 0x76f   : > { %v1170_v54 = vadd.f32 %v1169_v53, %v2641_v56 }
 0x770   : > { %v2211_v55 = vpop.f32.mrf.mxu0 }
 0x771   : > { %v1178_v57 = vsel %vm638_vm3, %v1170_v54, -inf }
 0x772   : > { %1179 = vmax.xlane.f32.xlu1 %v1178_v57  ;;  %v1172_v58 = vpop.f32.mrf.mxu0 }
 0x774   : > { %v2212_v59 = vpop.f32.mrf.mxu0 }
 0x783   : > { %1247 = vrot.lane.b32.xlu1 %v2625_v49, %s2445_s14 }
 0x787   : > { %1297 = vrot.lane.b32.xlu1 %v2622_v45, %s2446_s15 }
 0x78b   : > { %1347 = vrot.lane.b32.xlu1 %v2625_v49, %s2446_s15 }
 0x78f   : > { %1345 = vrot.lane.b32.xlu1 %v2625_v49, %s2447_s1 }
 0x7f3   : > { %v1177_v60 = vpop.xlane.xlu0 %1176 }
 0x7f4   : > { %v1181_v61 = vsub.f32 %v1120_v42, %v1177_v60 }
 0x7f6   : > { %v1183_v62 = vmul.f32 1.442695, %v1181_v61 }
 0x7f8   : > { %2367 = vpow2.f32 %v1183_v62 }
 0x7fb   : > { %v1180_v63 = vpop.xlane.xlu1 %1179 }
 0x7fc   : > { %v1182_v0 = vsub.f32 %v1170_v54, %v1180_v63 }
 0x7fe   : > { %v1185_v1 = vmul.f32 1.442695, %v1182_v0 }
 0x7ff   : > { %v1248_v4 = vpop.permute.xlu1 %1247 }
 0x800   : > { %2369 = vpow2.f32 %v1185_v1  ;;  %v1253_v5 = vsel %vm763_vm5, %v1248_v4, 0 }
 0x801   : > { %2220 = vmatpush3.bf16.msra.mxu0 %v1253_v5 }
 0x802   : > { %2231 = vmatprep.subr.bf16.mxu0 %v2435_v17 }
 0x803   : > { %v1298_v16 = vpop.permute.xlu1 %1297 }
 0x804   : > { %v1303_v19 = vsel %vm638_vm3, %v1298_v16, 0 }
 0x805   : > { %v2368_v6 = vpop.eup %2367 }
 0x806   : > { %v1187_v7 = vsel %vm638_vm3, %v2368_v6, 0.0 }
 0x807   : > { %1188 = vadd.xlane.f32.xlu0 %v1187_v7  ;;  %v1348_v22 = vpop.permute.xlu1 %1347 }
 0x808   : > { %v1353_v25 = vsel %vm638_vm3, %v1348_v22, 0 }
 0x80b   : > { %v1346_v29 = vpop.permute.xlu1 %1345 }
 0x80d   : > { %v2370_v8 = vpop.eup %2369 }
 0x80e   : > { %v1190_v9 = vsel %vm638_vm3, %v2370_v8, 0.0 }
 0x80f   : > { %1191 = vadd.xlane.f32.xlu0 %v1190_v9 }
 0x825   : > { %1199 = vrot.lane.b32.xlu0 %v2622_v45, %s2445_s14 }
 0x829   : > { %1295 = vrot.lane.b32.xlu0 %v2622_v45, %s2447_s1 }
 0x890   : > { %v1189_v10 = vpop.xlane.xlu0 %1188 }
 0x891   : > { %2371 = vrcp.f32 %v1189_v10 }
 0x898   : > { %v1192_v11 = vpop.xlane.xlu0 %1191 }
 0x899   : > { %2373 = vrcp.f32 %v1192_v11 }
 0x89c   : > { %v1200_v12 = vpop.permute.xlu0 %1199 }
 0x89d   : > { %v1205_v13 = vsel %vm763_vm5, %v1200_v12, 0 }
 0x89e   : > { %v2372_v14 = vpop.eup %2371  ;;  %2214 = vmatpush3.bf16.msra.mxu1 %v1205_v13 }
 0x89f   : > { %2225 = vmatprep.subr.bf16.mxu1 %v2435_v17  ;;  %v1195_v15 = vmul.f32 %v2372_v14, %v2368_v6  ;;  %v2335_v14 = vld [vmem:[%s2541_s29 + $0x8] sm:$0xff]  }
 0x8a0   : > { %v1296_v24 = vpop.permute.xlu0 %1295 }
 0x8a1   : > { %v1197_v18 = vpack.c.bf16 %v1195_v15, %v1195_v15  ;;  %v2336_v15 = vld [vmem:[%s2541_s29] sm:$0xff]  }
 0x8a3   : > { %2216 = vmatmul.mubr.msk.bf16.vlgmr.msra.gmra.mxu1 %vm638_vm3, %v1197_v18 }
 0x8a4   : > { %2226 = vmatpush3.bf16.xpose.msra.mxu1 %v1303_v19  ;;  %2227 = vmatprep.mubr.msk.bf16.mxu1 %vm2436_vm2, %v2435_v17 }
 0x8a5   : > { %2237 = vmatprep.subr.bf16.mxu1 %v2435_v17 }
 0x8a6   : > { %v2374_v20 = vpop.eup %2373 }
 0x8a7   : > { %v1196_v21 = vmul.f32 %v2374_v20, %v2370_v8 }
 0x8a9   : > { %v1198_v23 = vpack.c.bf16 %v1196_v21, %v1196_v21 }
 0x8ab   : > { %2222 = vmatmul.mubr.msk.bf16.vlgmr.msra.gmra.mxu0 %vm638_vm3, %v1198_v23  ;;  %2228 = vmatmul.mubr.msk.bf16.vlgmr.msra.gmra.mxu1 %vm638_vm3, %v1296_v24 }
 0x8ac   : > { %2232 = vmatpush3.bf16.xpose.msra.mxu0 %v1353_v25  ;;  %2233 = vmatprep.mubr.msk.bf16.mxu0 %vm2436_vm2, %v2435_v17 }
 0x8ad   : > { %2243 = vmatprep.subr.bf16.mxu0 %v2435_v17  ;;  %2239 = vmatprep.mubr.msk.bf16.mxu1 %vm2436_vm2, %v2435_v17 }
 0x8b3   : > { %2234 = vmatmul.mubr.msk.bf16.vlgmr.msra.gmra.mxu0 %vm638_vm3, %v1346_v29 }
 0x8b4   : > { %2245 = vmatprep.mubr.msk.bf16.mxu0 %vm2436_vm2, %v2435_v17 }
 0x963   : > { %v1241_v30 = vpop.f32.mrf.mxu1 }
 0x965   : > { %v2217_v31 = vpop.f32.mrf.mxu1 }
 0x967   : > { %v1244_v33 = vpop.f32.mrf.mxu1 }
 0x969   : > { %v2218_v35 = vpop.f32.mrf.mxu1 }
 0x96b   : > { %v1289_v36 = vpop.f32.mrf.mxu0  ;;  %v1339_v37 = vpop.f32.mrf.mxu1 }
 0x96c   : > { %v1340_v39 = vadd.f32 %v1339_v37, %v2641_v56  ;;  %v2323_v59 = vpack.i.bf16 %v1289_v36, %v1241_v30 }
 0x96d   : > { %v2223_v42 = vpop.f32.mrf.mxu0  ;;  %v2229_v43 = vpop.f32.mrf.mxu1 }
 0x96e   : > { %v1395_v46 = vsel %vm638_vm3, %v1340_v39, -inf }
 0x96f   : > { %1396 = vmax.xlane.f32.xlu0 %v1395_v46  ;;  %v1292_v47 = vpop.f32.mrf.mxu0  ;;  %v1342_v48 = vpop.f32.mrf.mxu1 }
 0x971   : > { %v2224_v50 = vpop.f32.mrf.mxu0  ;;  %v2230_v51 = vpop.f32.mrf.mxu1 }
 0x973   : > { %v1389_v52 = vpop.f32.mrf.mxu0 }
 0x974   : > { %v1390_v53 = vadd.f32 %v1389_v52, %v2641_v56 }
 0x975   : > { %v2235_v54 = vpop.f32.mrf.mxu0 }
 0x976   : > { %v1398_v55 = vsel %vm638_vm3, %v1390_v53, -inf }
 0x977   : > { %1399 = vmax.xlane.f32.xlu1 %v1398_v55  ;;  %v1392_v57 = vpop.f32.mrf.mxu0 }
 0x979   : > { %v2236_v58 = vpop.f32.mrf.mxu0 }
 0x988   : > { %1467 = vrot.lane.b32.xlu1 %v2625_v49, %s2448_s23 }
 0x98c   : > { %2319 = vrot.lane.b32.xlu1 %v2318_v41, %s2449_s3 }
 0x990   : > { %2324 = vrot.lane.b32.xlu1 %v2323_v59, %s2450_s17 }
 0x9f8   : > { %v1397_v60 = vpop.xlane.xlu0 %1396 }
 0x9f9   : > { %v1401_v56 = vsub.f32 %v1340_v39, %v1397_v60 }
 0x9fb   : > { %v1403_v61 = vmul.f32 1.442695, %v1401_v56 }
 0x9fd   : > { %2375 = vpow2.f32 %v1403_v61 }
 0xa00   : > { %v1400_v62 = vpop.xlane.xlu1 %1399 }
 0xa01   : > { %v1402_v63 = vsub.f32 %v1390_v53, %v1400_v62 }
 0xa03   : > { %v1405_v0 = vmul.f32 1.442695, %v1402_v63 }
 0xa04   : > { %v1468_v1 = vpop.permute.xlu1 %1467 }
 0xa05   : > { %2377 = vpow2.f32 %v1405_v0  ;;  %v1473_v49 = vsel %vm763_vm5, %v1468_v1, 0 }
 0xa06   : > { %2244 = vmatpush3.bf16.msra.mxu0 %v1473_v49 }
 0xa07   : > { %2257 = vmatprep.subr.bf16.mxu0 %v2435_v17 }
 0xa08   : > { %v2320_v29 = vpop.permute.xlu1 %2319 }
 0xa09   : > { %v2322_v31 = vunpack.i.h.bf16 %v2320_v29  ;;  %v2321_v33 = vunpack.i.l.bf16 %v2320_v29  ;;  %v2340_v29 = vld [vmem:[%s2560_s27 + $0x30] sm:$0xff]  }
 0xa0a   : > { %v2376_v4 = vpop.eup %2375 }
 0xa0b   : > { %v1407_v34 = vsel %vm638_vm3, %v2376_v4, 0.0  ;;  %v1540_v39 = vsel %vm638_vm3, %v2677_v44, %v2322_v31  ;;  %v1539_v42 = vsel %vm638_vm3, %v2675_v40, %v2321_v33  ;;  %v2067_v44 = vld [vmem:[%s2887_s21] ss:$0 sm:$0xff]  ;;  %v2343_v31 = vld [vmem:[%s2560_s27 + $0x18] sm:$0xff]   ;;  %v2344_v33 = vld [vmem:[%s2560_s27 + $0x10] sm:$0xff]  }
 0xa0c   : > { %1408 = vadd.xlane.f32.xlu0 %v1407_v34  ;;  %v2325_v30 = vpop.permute.xlu1 %2324 }
 0xa0d   : > { %v2327_v35 = vunpack.i.h.bf16 %v2325_v30  ;;  %v2326_v36 = vunpack.i.l.bf16 %v2325_v30  ;;  %v2341_v30 = vld [vmem:[%s2560_s27 + $0x28] sm:$0xff]  }
 0xa0f   : > { %v1542_v47 = vsel %vm1541_vm6, %v1539_v42, %v2326_v36  ;;  %v1543_v48 = vsel %vm1541_vm6, %v1540_v39, %v2327_v35  ;;  %v2345_v35 = vld [vmem:[%s2560_s27 + $0x8] sm:$0xff]   ;;  %v2346_v36 = vld [vmem:[%s2560_s27] sm:$0xff]  }
 0xa12   : > { %v2378_v38 = vpop.eup %2377 }
 0xa13   : > { %v1410_v41 = vsel %vm638_vm3, %v2378_v38, 0.0 }
 0xa14   : > { %1411 = vadd.xlane.f32.xlu0 %v1410_v41  ;;  %v2337_v41 = vld [vmem:[%s2550_s16 + $0x8] sm:$0xff]  }
 0xa2a   : > { %1419 = vrot.lane.b32.xlu0 %v2622_v45, %s2448_s23 }
 0xa95   : > { %v1409_v5 = vpop.xlane.xlu0 %1408 }
 0xa96   : > { %2379 = vrcp.f32 %v1409_v5  ;;  %v2338_v5 = vld [vmem:[%s2550_s16] sm:$0xff]  }
 0xa9d   : > { %v1412_v6 = vpop.xlane.xlu0 %1411 }
 0xa9e   : > { %2381 = vrcp.f32 %v1412_v6 }
 0xaa1   : > { %v1420_v7 = vpop.permute.xlu0 %1419 }
 0xaa2   : > { %v1425_v8 = vsel %vm763_vm5, %v1420_v7, 0 }
 0xaa3   : > { %v2380_v9 = vpop.eup %2379  ;;  %2238 = vmatpush3.bf16.msra.mxu1 %v1425_v8 }
 0xaa4   : > { %v1415_v10 = vmul.f32 %v2380_v9, %v2376_v4  ;;  %2249 = vmatprep.subr.bf16.mxu1 %v2435_v17 }
 0xaa6   : > { %v1417_v11 = vpack.c.bf16 %v1415_v10, %v1415_v10 }
 0xaa8   : > { %2240 = vmatmul.mubr.msk.bf16.vlgmr.msra.gmra.mxu1 %vm638_vm3, %v1417_v11 }
 0xaa9   : > { %2253 = vmatprep.mubr.msk.bf16.mxu1 %vm2436_vm2, %v2435_v17  ;;  %2250 = vmatpush3.bf16.msra.mxu1 %v2335_v14 }
 0xaaa   : > { %2251 = vmatprep.subr.bf16.mxu1 %v2435_v17 }
 0xaab   : > { %v2382_v45 = vpop.eup %2381 }
 0xaac   : > { %v1416_v12 = vmul.f32 %v2382_v45, %v2378_v38  ;;  %v1645_v45 = vsub.s32 2, %v2601_v26 }
 0xaad   : > { %2252 = vmatpush3.bf16.msra.mxu1 %v2336_v15  ;;  %v1651_v15 = vsub.s32 3, %v2601_v26 }
 0xaae   : > { %v1418_v13 = vpack.c.bf16 %v1416_v12, %v1416_v12  ;;  %2265 = vmatprep.subr.bf16.mxu1 %v2435_v17  ;;  %v1646_v14 = vrot.slane %v2605_v28, %v1645_v45 }
 0xab0   : > { %2246 = vmatmul.mubr.msk.bf16.vlgmr.msra.gmra.mxu0 %vm638_vm3, %v1418_v13 }
 0xab1   : > { %2261 = vmatprep.mubr.msk.bf16.mxu0 %vm2436_vm2, %v2435_v17  ;;  %2258 = vmatpush3.bf16.msra.mxu0 %v2337_v41 }
 0xab2   : > { %2259 = vmatprep.subr.bf16.mxu0 %v2435_v17 }
 0xab5   : > { %2260 = vmatpush3.bf16.msra.mxu0 %v2338_v5 }
 0xb68   : > { %v1461_v16 = vpop.f32.mrf.mxu1 }
 0xb6a   : > { %v2241_v18 = vpop.f32.mrf.mxu1 }
 0xb6c   : > { %v1464_v19 = vpop.f32.mrf.mxu1 }
 0xb6e   : > { %v2242_v20 = vpop.f32.mrf.mxu1 }
 0xb6f   : > { %v1652_v20 = vrot.slane %v2605_v28, %v1651_v15  ;;  %v2342_v28 = vld [vmem:[%s2560_s27 + $0x20] sm:$0xff]  }
 0xb70   : > { %v1509_v21 = vpop.f32.mrf.mxu0 }
 0xb71   : > { %v2328_v22 = vpack.i.bf16 %v1509_v21, %v1461_v16 }
 0xb72   : > { %v2247_v23 = vpop.f32.mrf.mxu0 }
 0xb73   : > { %2329 = vrot.lane.b32.xlu0 %v2328_v22, %s2451_s26 }
 0xb74   : > { %v1512_v24 = vpop.f32.mrf.mxu0 }
 0xb76   : > { %v2248_v25 = vpop.f32.mrf.mxu0 }
 0xb77   : > { %v2339_v25 = vld [vmem:[%s2560_s27 + $0x38] sm:$0xff]  }
 0xbe5   : > { %v2330_v37 = vpop.permute.xlu0 %2329 }
 0xbe6   : > { %v2332_v43 = vunpack.i.h.bf16 %v2330_v37  ;;  %v2331_v46 = vunpack.i.l.bf16 %v2330_v37  ;;  %v2071_v37 = vld [vmem:[%s493_s24] ss:$0 sm:$0xff] }
 0xbe8   : > { %v1546_v50 = vsel %vm1544_vm7, %v1543_v48, %v2332_v43  ;;  %v1545_v51 = vsel %vm1544_vm7, %v1542_v47, %v2331_v46 }
 0xbe9   : > { %v1547_v52 = vpack.c.bf16 %v1546_v50, %v1545_v51 }
 0xbeb   : > { %2254 = vmatmul.mubr.msk.bf16.vlgmr.msra.gmra.mxu1 %vm525_vm1, %v1547_v52 }
 0xbec   : > { %2281 = vmatprep.mubr.msk.bf16.mxu1 %vm2436_vm2, %v2435_v17  ;;  %2266 = vmatpush3.bf16.msra.mxu1 %v2339_v25 }
 0xbed   : > { %2267 = vmatprep.subr.bf16.mxu1 %v2435_v17 }
 0xbf0   : > { %2268 = vmatpush3.bf16.msra.mxu1 %v2340_v29 }
 0xbf1   : > { %2269 = vmatprep.subr.bf16.mxu1 %v2435_v17 }
 0xbf4   : > { %2270 = vmatpush3.bf16.msra.mxu1 %v2341_v30 }
 0xbf5   : > { %2271 = vmatprep.subr.bf16.mxu1 %v2435_v17 }
 0xbf8   : > { %2272 = vmatpush3.bf16.msra.mxu1 %v2342_v28 }
 0xbf9   : > { %2273 = vmatprep.subr.bf16.mxu1 %v2435_v17 }
 0xbfc   : > { %2274 = vmatpush3.bf16.msra.mxu1 %v2343_v31 }
 0xbfd   : > { %2275 = vmatprep.subr.bf16.mxu1 %v2435_v17 }
 0xc00   : > { %2276 = vmatpush3.bf16.msra.mxu1 %v2344_v33 }
 0xc01   : > { %2277 = vmatprep.subr.bf16.mxu1 %v2435_v17 }
 0xc04   : > { %2278 = vmatpush3.bf16.msra.mxu1 %v2345_v35 }
 0xc05   : > { %2279 = vmatprep.subr.bf16.mxu1 %v2435_v17 }
 0xc08   : > { %2280 = vmatpush3.bf16.msra.mxu1 %v2346_v36 }
 0xcab   : > { %v1608_v53 = vpop.f32.mrf.mxu1 }
 0xcac   : > { %v1609_v54 = vadd.f32 %v2067_v44, %v1608_v53 }
 0xcad   : > { %v2255_v40 = vpop.f32.mrf.mxu1 }
 0xcae   : > { %v2788_v55 = vadd.f32 %v1609_v54, %v2579_v2 }
 0xcaf   : > { %v1611_v57 = vpop.f32.mrf.mxu1 }
 0xcb0   : > { %v1612_v58 = vadd.f32 %v2067_v44, %v1611_v57  ;;  %v1617_v59 = vsel %vm525_vm1, %v2788_v55, 0.0 }
 0xcb1   : > { %1618 = vadd.xlane.f32.xlu1 %v1617_v59  ;;  %v2256_v60 = vpop.f32.mrf.mxu1 }
 0xcb2   : > { %v2793_v56 = vadd.f32 %v1612_v58, %v2581_v3 }
 0xcb4   : > { %v1620_v61 = vsel %vm525_vm1, %v2793_v56, 0.0 }
 0xcb5   : > { %1621 = vadd.xlane.f32.xlu0 %v1620_v61 }
 0xd3a   : > { %v1619_v62 = vpop.xlane.xlu1 %1618 }
 0xd3b   : > { %v1623_v63 = vmul.f32 0.03125, %v1619_v62  ;;  %v2077_v62 = vld [vmem:[%s501_s30] ss:$0 sm:$0xff] }
 0xd3d   : > { %v1625_v2 = vsub.f32 %v2788_v55, %v1623_v63 }
 0xd3e   : > { %v1622_v0 = vpop.xlane.xlu0 %1621 }
 0xd3f   : > { %v1624_v1 = vmul.f32 0.03125, %v1622_v0  ;;  %v1627_v49 = vmul.f32 %v1625_v2, %v1625_v2 }
 0xd41   : > { %v1626_v4 = vsub.f32 %v2793_v56, %v1624_v1  ;;  %v1629_v34 = vsel %vm525_vm1, %v1627_v49, 0.0 }
 0xd42   : > { %1630 = vadd.xlane.f32.xlu0 %v1629_v34 }
 0xd43   : > { %v1628_v38 = vmul.f32 %v1626_v4, %v1626_v4 }
 0xd45   : > { %v1632_v3 = vsel %vm525_vm1, %v1628_v38, 0.0 }
 0xd46   : > { %1633 = vadd.xlane.f32.xlu0 %v1632_v3 }
 0xdcb   : > { %v1631_v6 = vpop.xlane.xlu0 %1630 }
 0xdcc   : > { %v1635_v7 = vmul.f32 0.03125, %v1631_v6 }
 0xdce   : > { %v1637_v8 = vadd.f32 1e-05, %v1635_v7 }
 0xdcf   : > { %v1634_v9 = vpop.xlane.xlu0 %1633 }
 0xdd0   : > { %2383 = vrsqrt.f32 %v1637_v8  ;;  %v1636_v10 = vmul.f32 0.03125, %v1634_v9 }
 0xdd2   : > { %v1638_v11 = vadd.f32 1e-05, %v1636_v10 }
 0xdd4   : > { %2385 = vrsqrt.f32 %v1638_v11 }
 0xddd   : > { %v2384_v12 = vpop.eup %2383 }
 0xdde   : > { %v1641_v13 = vmul.f32 %v2384_v12, %v1625_v2 }
 0xde0   : > { %v1647_v19 = vmul.f32 %v1646_v14, %v1641_v13 }
 0xde1   : > { %v2386_v16 = vpop.eup %2385 }
 0xde2   : > { %v1642_v18 = vmul.f32 %v2386_v16, %v1626_v4  ;;  %v1653_v22 = vadd.f32 %v1652_v20, %v1647_v19 }
 0xde4   : > { %v1648_v21 = vmul.f32 %v1646_v14, %v1642_v18 }
 0xde6   : > { %v1654_v23 = vadd.f32 %v1652_v20, %v1648_v21 }
 0xde8   : > { %v1655_v24 = vpack.c.bf16 %v1654_v23, %v1653_v22 }
 0xdea   : > { %2262 = vmatmul.mubr.msk.bf16.vlgmr.msra.gmra.mxu0 %vm525_vm1, %v1655_v24 }
 0xeaa   : > { %v1716_v39 = vpop.f32.mrf.mxu0 }
 0xeab   : > { %v1717_v42 = vadd.f32 %v2071_v37, %v1716_v39 }
 0xeac   : > { %v2263_v43 = vpop.f32.mrf.mxu0 }
 0xead   : > { %v2075_v46 = vmul.f32 -1.702, %v1717_v42 }
 0xeae   : > { %v1719_v47 = vpop.f32.mrf.mxu0 }
 0xeaf   : > { %v1727_v48 = vmul.f32 1.442695, %v2075_v46  ;;  %v1720_v50 = vadd.f32 %v2071_v37, %v1719_v47 }
 0xeb0   : > { %v2264_v51 = vpop.f32.mrf.mxu0 }
 0xeb1   : > { %2387 = vpow2.f32 %v1727_v48  ;;  %v2076_v52 = vmul.f32 -1.702, %v1720_v50 }
 0xeb3   : > { %v1729_v44 = vmul.f32 1.442695, %v2076_v52 }
 0xeb5   : > { %2389 = vpow2.f32 %v1729_v44 }
 0xebe   : > { %v2388_v17 = vpop.eup %2387 }
 0xebf   : > { %v1731_v53 = vadd.f32 1.0, %v2388_v17 }
 0xec1   : > { %2391 = vrcp.f32 %v1731_v53 }
 0xec2   : > { %v2390_v54 = vpop.eup %2389 }
 0xec3   : > { %v1732_v40 = vadd.f32 1.0, %v2390_v54 }
 0xec5   : > { %2393 = vrcp.f32 %v1732_v40 }
 0xece   : > { %v2392_v57 = vpop.eup %2391 }
 0xecf   : > { %v1737_v59 = vmul.f32 %v2392_v57, %v1717_v42 }
 0xed2   : > { %v2394_v58 = vpop.eup %2393 }
 0xed3   : > { %v1738_v60 = vmul.f32 %v2394_v58, %v1720_v50 }
 0xed5   : > { %v1739_v61 = vpack.c.bf16 %v1738_v60, %v1737_v59 }
 0xed7   : > { %2282 = vmatmul.mubr.bf16.vlgmr.msra.gmra.mxu1 %v1739_v61 }
 0xf97   : > { %v1845_v63 = vpop.f32.mrf.mxu1 }
 0xf98   : > { %v1846_v2 = vadd.f32 %v2077_v62, %v1845_v63 }
 0xf99   : > { %v2283_v0 = vpop.f32.mrf.mxu1 }
 0xf9a   : > { %v1852_v1 = vadd.f32 %v1846_v2, %v2788_v55 }
 0xf9b   : > { %v1848_v49 = vpop.f32.mrf.mxu1 }
 0xf9c   : > { %1854 = vst.msk [vmem:[#allocation2] sm:$0xff] %vm525_vm1, %v1852_v1  ;;  %v1849_v4 = vadd.f32 %v2077_v62, %v1848_v49  ;;  %1859 = sbr.rel (%p2086_p5) target bundleno = 4314 (0x10da), region = 72 }
 0xf9d   : > { %v2284_v34 = vpop.f32.mrf.mxu1 }
 0xf9e   : > { %v1853_v38 = vadd.f32 %v1849_v4, %v2793_v56 }
 0xfa0   : > { %1855 = vst.msk [vmem:[#allocation2 + $0x8] sm:$0xff] %vm525_vm1, %v1853_v38 }
 0xfa1   : > { %v1861_v3 = vsel %vm525_vm1, %v1852_v1, 0.0  ;;  %v1864_v41 = vsel %vm525_vm1, %v1853_v38, 0.0  ;;  %v1860_v19 = vld [vmem:[%s2878_s10] sm:$0x3] }
 0xfa2   : > { %1862 = vadd.xlane.f32.xlu0 %v1861_v3  ;;  %v1890_v20 = vrot.slane %v1860_v19, %v555_v27  ;;  %v1896_v23 = vrot.slane %v1860_v19, %v561_v32 }
 0xfa6   : > { %1865 = vadd.xlane.f32.xlu0 %v1864_v41 }
0x102b   : > { %v1863_v5 = vpop.xlane.xlu0 %1862 }
0x102c   : > { %v1867_v55 = vmul.f32 0.03125, %v1863_v5 }
0x102e   : > { %v1869_v6 = vsub.f32 %v1852_v1, %v1867_v55 }
0x102f   : > { %v1866_v7 = vpop.xlane.xlu0 %1865 }
0x1030   : > { %v1868_v8 = vmul.f32 0.03125, %v1866_v7  ;;  %v1871_v9 = vmul.f32 %v1869_v6, %v1869_v6 }
0x1032   : > { %v1870_v10 = vsub.f32 %v1853_v38, %v1868_v8  ;;  %v1873_v56 = vsel %vm525_vm1, %v1871_v9, 0.0 }
0x1033   : > { %1874 = vadd.xlane.f32.xlu1 %v1873_v56 }
0x1034   : > { %v1872_v11 = vmul.f32 %v1870_v10, %v1870_v10 }
0x1036   : > { %v1876_v45 = vsel %vm525_vm1, %v1872_v11, 0.0 }
0x1037   : > { %1877 = vadd.xlane.f32.xlu1 %v1876_v45 }
0x10bc   : > { %v1875_v12 = vpop.xlane.xlu1 %1874 }
0x10bd   : > { %v1879_v13 = vmul.f32 0.03125, %v1875_v12 }
0x10bf   : > { %v1881_v14 = vadd.f32 1e-05, %v1879_v13 }
0x10c0   : > { %v1878_v15 = vpop.xlane.xlu1 %1877 }
0x10c1   : > { %2395 = vrsqrt.f32 %v1881_v14  ;;  %v1880_v16 = vmul.f32 0.03125, %v1878_v15 }
0x10c3   : > { %v1882_v18 = vadd.f32 1e-05, %v1880_v16 }
0x10c5   : > { %2397 = vrsqrt.f32 %v1882_v18 }
0x10ce   : > { %v2396_v21 = vpop.eup %2395 }
0x10cf   : > { %v1885_v22 = vmul.f32 %v2396_v21, %v1869_v6 }
0x10d1   : > { %v1891_v24 = vmul.f32 %v1890_v20, %v1885_v22 }
0x10d2   : > { %v2398_v25 = vpop.eup %2397 }
0x10d3   : > { %v1897_v29 = vadd.f32 %v1896_v23, %v1891_v24  ;;  %v1886_v30 = vmul.f32 %v2398_v25, %v1870_v10 }
0x10d5   : > { %1899 = vst.msk [vmem:[#allocation3] sm:$0xff] %vm525_vm1, %v1897_v29  ;;  %v1892_v28 = vmul.f32 %v1890_v20, %v1886_v30 }
0x10d7   : > { %v1898_v31 = vadd.f32 %v1896_v23, %v1892_v28 }
0x10d9   : > { %1900 = vst.msk [vmem:[#allocation3 + $0x8] sm:$0xff] %vm525_vm1, %v1898_v31 }
0x10da PF: > { %p2289_p6 = scmp.eq.s32.totalorder %s2520_s18, 1  ;;  %s2452_s25 = smov [#allocation3]  }
0x10db   : > { %s1907_s28 = sshll.u32 %s2452_s25, 4  ;;  %s1908_s28 = int_to_ptr.vmem [resolvable:$true] %s1907_s28 }
0x10dc   : > { %s2399_s12 = scalar_lea.vmem %s1908_s28, 256  ;;  %p2406_p10 = scmp.lt.s32.totalorder %s1908_s28, %s1908_s28 }
0x10dd   : > { %p2400_p7 = scmp.ne.s32.totalorder %s1908_s28, %s2399_s12  ;;  %p2407_p11 = scmp.lt.s32.totalorder %s2399_s12, %s2399_s12 }
0x10df   : > { %p2401_p8 = pnand %p2400_p7, %p2289_p6  ;;  %p2408_p12 = por %p2407_p11, %p2406_p10 }
0x10e1   : > { %p2402_p9 = pneg %p2401_p8 }
0x10e3   : > { %p2409_p13 = pnand %p2408_p12, %p2402_p9 }
0x10e5   : > { %2412 = shalt.err (!%p2409_p13)
}
0x10e6   : > { %s2453_s20 = smov 128  }
0x10e7   : > { %2286 = dma.vmem_to_hbm [thread:$0]  (%p2289_p6), %s1908_s28, 256, %s2879_s11, [#allocation4], %s2453_s20, %s2453_s20, %s2449_s3  }
0x10e8   : > { %2428 = dma.done.wait (%p2289_p6), [#allocation4], 256  }
0x10e9   : > { %2430 = vsyncadd (%p2289_p6), [#allocation4], 4294967040 }
0x10ea PF: > { %s2888_s1 = sld [smem:[#allocation6_spill]] }
0x10f0   : > { %s22_s17 = sadd.s32 1, %s2888_s1  }
0x10f1   : > { %p19_p0 = scmp.ge.s32.totalorder %s22_s17, 4  }
0x10f3   :  { %21 = sbr.rel (!%p19_p0) target bundleno = 4 (0x4), region = 123 }
0x10f8   :  { %1923 = vsyncpa [#allocation4], 1 }
0x10f9   :  { %1925 = vsyncpa [#allocation4 + $0x1], 1 }

</bundles_post_ra>
